<compile_context>
chip_gen: v7x
topology: tpu7x:2x2x1
jax: 0.10.0
libtpu: 0.0.40
codegen_flags: <defaults>
</compile_context>

<pallas_src>
import math
import functools

import jax
import jax.numpy as jnp
from jax.experimental import pallas as pl
from jax.experimental.pallas import tpu as pltpu


def _mha_kernel(q_ref, k_ref, v_ref,
                wq_ref, wk_ref, wv_ref, wo_ref,
                bo_ref, bg_ref, gamma_ref, beta_ref,
                o_ref,
                *, num_heads: int, d_k: int, ln_eps: float):
    Bt, S, D = q_ref.shape
    H = num_heads
    G = Bt * H
    inv_sqrt_dk = 1.0 / math.sqrt(d_k)

    # Residual / query block in f32, MXU operands in bf16.
    x = q_ref[...].astype(jnp.float32)            # (Bt, S, D)
    xq = x.astype(jnp.bfloat16)
    xk = k_ref[...]                               # (Bt, S, D) bf16 (cast in wrapper)
    xv = v_ref[...]

    def rep_x(a):
        # (Bt, S, D) -> (G, S, D): replicate per head along a new leading dim.
        return jnp.broadcast_to(a[:, None], (Bt, H, S, D)).reshape(G, S, D)

    def rep_w(w):
        # (H, ...) -> (G, ...): replicate per batch element of the block.
        return jnp.broadcast_to(w[None], (Bt,) + w.shape).reshape((G,) + w.shape[1:])

    xq_g = rep_x(xq)
    xk_g = rep_x(xk)
    xv_g = rep_x(xv)

    wq_g = rep_w(wq_ref[...])                     # (G, d_k + 1, D)  bf16 (Q cols + gate col)
    wk_g = rep_w(wk_ref[...])                     # (G, d_k, D)      bf16
    wv_g = rep_w(wv_ref[...])                     # (G, d_k, D)      bf16
    wo_g = rep_w(wo_ref[...])                     # (G, D, d_k)      bf16
    bg_g = rep_w(bg_ref[...].astype(jnp.float32)) # (G, 1, 1)        f32

    # Head-batched projections (bf16 MXU operands, f32 accumulation).
    qg = jnp.einsum('gsc,gtc->gst', xq_g, wq_g,
                    preferred_element_type=jnp.float32)       # (G, S, d_k + 1)
    kh = jnp.einsum('gsc,gdc->gsd', xk_g, wk_g,
                    preferred_element_type=jnp.float32)       # (G, S, d_k)
    vh = jnp.einsum('gsc,gdc->gsd', xv_g, wv_g,
                    preferred_element_type=jnp.float32)       # (G, S, d_k)

    # Content gate (fused extra column of the Q projection), then fold the
    # gate and the 1/sqrt(d_k) scale into Q before the score matmul:
    #   gate * (Q . K) / sqrt(d_k) == ((gate/sqrt(d_k)) * Q) . K
    gate = jax.nn.sigmoid(qg[..., d_k:d_k + 1] + bg_g)        # (G, S, 1)
    qh = qg[..., :d_k] * (gate * inv_sqrt_dk)                 # (G, S, d_k) f32

    # Gated scaled dot-product attention (head-batched).
    scores = jnp.einsum('gqd,gkd->gqk',
                        qh.astype(jnp.bfloat16), kh.astype(jnp.bfloat16),
                        preferred_element_type=jnp.float32)   # (G, S, S)
    scores = scores - jnp.max(scores, axis=-1, keepdims=True)
    p = jnp.exp(scores)
    p = p * pl.reciprocal(jnp.sum(p, axis=-1, keepdims=True), approx=True)
    # Dropout on attention weights is identity in eval mode.

    ctx = jnp.einsum('gqk,gkd->gqd',
                     p.astype(jnp.bfloat16), vh.astype(jnp.bfloat16),
                     preferred_element_type=jnp.float32)      # (G, S, d_k)

    # Output projection: per-head partials then sum over heads (== concat @ Wo).
    partial = jnp.einsum('gsd,ged->gse',
                         ctx.astype(jnp.bfloat16), wo_g,
                         preferred_element_type=jnp.float32)  # (G, S, D)
    p4 = partial.reshape(Bt, H, S, D)
    out = p4[:, 0]
    for h in range(1, H):                                     # H static & small
        out = out + p4[:, h]                                  # (Bt, S, D)

    # Bias + residual + LayerNorm (f32).
    y = out + bo_ref[...] + x
    mean = jnp.mean(y, axis=-1, keepdims=True)
    var = jnp.mean(jnp.square(y - mean), axis=-1, keepdims=True)
    y = (y - mean) * jax.lax.rsqrt(var + ln_eps)
    y = y * gamma_ref[...] + beta_ref[...]

    o_ref[...] = y.astype(o_ref.dtype)


def _pick_block_batch(B: int, S: int, max_rows: int = 512) -> int:
    """Largest divisor of B with block rows <= max_rows, keeping >=2 grid steps."""
    best = 1
    for cand in range(1, B + 1):
        if B % cand:
            continue
        if cand * S > max_rows:
            continue
        if cand == B and B > 1:
            continue  # keep >= 2 grid steps so v7x megacore has work to split
        best = cand
    return best


def mha_forward(query, key, value, params, *, num_heads: int, block_batch=None):
    """Pallas wrapper. query/key/value: (B, S, D) float32."""
    B, S, D = query.shape
    H = num_heads
    d_k = D // H

    wq, wk, wv = params["wq"], params["wk"], params["wv"]
    wo, bo = params["wo"], params["bo"]
    wg, bg = params["wg"], params["bg"]
    gamma, beta = params["gamma"], params["beta"]

    # Host-side (free) weight re-layout into head-major slabs, bf16 for the MXU.
    wq_heads = wq.T.reshape(H, d_k, D)                       # [h, d, c] = wq[c, h*d_k + d]
    wg_heads = wg.T.reshape(H, 1, D)                         # [h, 0, c] = wg[c, h]
    wq_aug = jnp.concatenate([wq_heads, wg_heads], axis=1).astype(jnp.bfloat16)  # (H, d_k+1, D)
    wk_heads = wk.T.reshape(H, d_k, D).astype(jnp.bfloat16)  # (H, d_k, D)
    wv_heads = wv.T.reshape(H, d_k, D).astype(jnp.bfloat16)  # (H, d_k, D)
    wo_heads = jnp.swapaxes(wo.reshape(H, d_k, D), 1, 2).astype(jnp.bfloat16)    # (H, D, d_k)
    bg_heads = bg.reshape(H, 1, 1).astype(jnp.float32)       # (H, 1, 1)

    key_bf = key.astype(jnp.bfloat16)
    value_bf = value.astype(jnp.bfloat16)

    Bt = _pick_block_batch(B, S) if block_batch is None else block_batch
    assert B % Bt == 0, "block_batch must divide batch"
    grid = (B // Bt,)

    seq_spec = pl.BlockSpec((Bt, S, D), lambda b: (b, 0, 0))
    full3 = lambda shape: pl.BlockSpec(shape, lambda b: (0, 0, 0))
    full2 = lambda shape: pl.BlockSpec(shape, lambda b: (0, 0))

    # Rough VMEM budget (double-buffered blocks + resident bf16 weights + intermediates).
    blk_bytes = 2 * Bt * S * D * (4 + 2 + 2 + 4)
    w_bytes = 2 * 2 * int(wq_aug.size + wk_heads.size + wv_heads.size + wo_heads.size)
    interm = 2 * 4 * Bt * H * S * (3 * d_k + 2 * S + 3 * D)
    vmem_limit = int(min(64 << 20, max(16 << 20, 2 * (blk_bytes + w_bytes + interm))))

    flops = (2 * B * S * D * (3 * D + H)        # Q/K/V + gate projections
             + 4 * B * S * S * D                # scores + attn@V (all heads)
             + 2 * B * S * D * D)               # output projection
    transcendentals = B * H * S * S + B * S * H
    bytes_accessed = (4 * B * S * D             # query (f32)
                      + 2 * 2 * B * S * D       # key/value (bf16)
                      + 4 * B * S * D           # output (f32)
                      + 2 * int(wq_aug.size + wk_heads.size + wv_heads.size + wo_heads.size)
                      + 4 * int(bo.size + bg_heads.size + gamma.size + beta.size))

    kernel = functools.partial(_mha_kernel, num_heads=H, d_k=d_k, ln_eps=1e-5)

    return pl.pallas_call(
        kernel,
        out_shape=jax.ShapeDtypeStruct((B, S, D), jnp.float32),
        grid=grid,
        in_specs=[
            seq_spec, seq_spec, seq_spec,                    # query (f32), key, value (bf16)
            full3((H, d_k + 1, D)),                          # Wq augmented with gate column
            full3((H, d_k, D)), full3((H, d_k, D)),          # Wk, Wv (head-major)
            full3((H, D, d_k)),                              # Wo (head-major, transposed)
            full2((1, D)),                                   # bo
            full3((H, 1, 1)),                                # bg (per head)
            full2((1, D)), full2((1, D)),                    # gamma, beta
        ],
        out_specs=seq_spec,
        compiler_params=pltpu.CompilerParams(
            dimension_semantics=("parallel",),
            vmem_limit_bytes=vmem_limit),
        cost_estimate=pl.CostEstimate(
            flops=int(flops),
            transcendentals=int(transcendentals),
            bytes_accessed=int(bytes_accessed)),
    )(query, key_bf, value_bf,
      wq_aug, wk_heads, wv_heads, wo_heads,
      bo, bg_heads, gamma, beta)


def mha_reference(query, key, value, params, *, num_heads: int):
    """Pure-JAX f32 reference mirroring the PyTorch forward (eval, mask=None)."""
    B, S, D = query.shape
    d_k = D // num_heads
    Q = query @ params["wq"]
    K = key @ params["wk"]
    V = value @ params["wv"]
    Q = Q.reshape(B, S, num_heads, d_k).transpose(0, 2, 1, 3)
    K = K.reshape(B, S, num_heads, d_k).transpose(0, 2, 1, 3)
    V = V.reshape(B, S, num_heads, d_k).transpose(0, 2, 1, 3)
    scores = jnp.einsum("bhqd,bhkd->bhqk", Q, K) / math.sqrt(d_k)
    gate = jax.nn.sigmoid(query @ params["wg"] + params["bg"][0])   # (B, S, H)
    gate = gate.transpose(0, 2, 1)[..., None]                        # (B, H, S, 1)
    scores = scores * gate
    attn = jax.nn.softmax(scores, axis=-1)
    out = jnp.einsum("bhqk,bhkd->bhqd", attn, V)
    out = out.transpose(0, 2, 1, 3).reshape(B, S, D)
    out = out @ params["wo"] + params["bo"][0]
    y = out + query
    mean = jnp.mean(y, axis=-1, keepdims=True)
    var = jnp.mean(jnp.square(y - mean), axis=-1, keepdims=True)
    y = (y - mean) / jnp.sqrt(var + 1e-5)
    return y * params["gamma"][0] + params["beta"][0]


def init_params(key, d_model: int, num_heads: int):
    ks = jax.random.split(key, 6)
    scale = 1.0 / math.sqrt(d_model)
    return {
        # Linear weights stored as (in_features, out_features).
        "wq": jax.random.normal(ks[0], (d_model, d_model), jnp.float32) * scale,
        "wk": jax.random.normal(ks[1], (d_model, d_model), jnp.float32) * scale,
        "wv": jax.random.normal(ks[2], (d_model, d_model), jnp.float32) * scale,
        "wo": jax.random.normal(ks[3], (d_model, d_model), jnp.float32) * scale,
        "bo": jax.random.normal(ks[4], (1, d_model), jnp.float32) * 0.01,
        "wg": jax.random.normal(ks[5], (d_model, num_heads), jnp.float32) * scale,
        "bg": jnp.zeros((1, num_heads), jnp.float32),
        "gamma": jnp.ones((1, d_model), jnp.float32),
        "beta": jnp.zeros((1, d_model), jnp.float32),
    }


if __name__ == "__main__":
    B, S, D, H = 8, 8, 32, 4

    root = jax.random.PRNGKey(0)
    kq, kk, kv, kp = jax.random.split(root, 4)
    query = jax.random.normal(kq, (B, S, D), jnp.float32)
    key = jax.random.normal(kk, (B, S, D), jnp.float32)
    value = jax.random.normal(kv, (B, S, D), jnp.float32)
    params = init_params(kp, D, H)

    out = mha_forward(query, key, value, params, num_heads=H)
    out = jax.block_until_ready(out)

    ref = mha_reference(query, key, value, params, num_heads=H)
    assert out.shape == (B, S, D)
    rel = jnp.linalg.norm(out - ref) / jnp.linalg.norm(ref)
    # bf16 MXU operands with f32 accumulation -> small relative error vs f32 reference.
    assert bool(rel < 2e-2), f"relative error too large: {rel}"

    print("KERNEL_OK")
</pallas_src>

<mosaic_0001>
module attributes {stable_mosaic.version = 11 : i64} {
  func.func @_mha_kernel(%arg0: i32, %arg1: memref<4x8x32xf32, #tpu.memory_space<vmem>>, %arg2: memref<4x8x32xbf16, #tpu.memory_space<vmem>>, %arg3: memref<4x8x32xbf16, #tpu.memory_space<vmem>>, %arg4: memref<4x9x32xbf16, #tpu.memory_space<vmem>>, %arg5: memref<4x8x32xbf16, #tpu.memory_space<vmem>>, %arg6: memref<4x8x32xbf16, #tpu.memory_space<vmem>>, %arg7: memref<4x32x8xbf16, #tpu.memory_space<vmem>>, %arg8: memref<1x32xf32, #tpu.memory_space<vmem>>, %arg9: memref<4x1x1xf32, #tpu.memory_space<vmem>>, %arg10: memref<1x32xf32, #tpu.memory_space<vmem>>, %arg11: memref<1x32xf32, #tpu.memory_space<vmem>>, %arg12: memref<4x8x32xf32, #tpu.memory_space<vmem>>) attributes {dimension_semantics = [#tpu.dimension_semantics<parallel>], iteration_bounds = array<i64: 2>, scalar_prefetch = 0 : i64, scratch_operands = 0 : i64, tpu.core_type = #tpu.core_type<tc>, window_params = [{transform_indices = @transform_0, window_bounds = array<i64: 4, 8, 32>}, {transform_indices = @transform_1, window_bounds = array<i64: 4, 8, 32>}, {transform_indices = @transform_2, window_bounds = array<i64: 4, 8, 32>}, {pipeline_mode = #tpu.pipeline_mode<synchronous>, transform_indices = @transform_3, window_bounds = array<i64: 4, 9, 32>}, {pipeline_mode = #tpu.pipeline_mode<synchronous>, transform_indices = @transform_4, window_bounds = array<i64: 4, 8, 32>}, {pipeline_mode = #tpu.pipeline_mode<synchronous>, transform_indices = @transform_5, window_bounds = array<i64: 4, 8, 32>}, {pipeline_mode = #tpu.pipeline_mode<synchronous>, transform_indices = @transform_6, window_bounds = array<i64: 4, 32, 8>}, {pipeline_mode = #tpu.pipeline_mode<synchronous>, transform_indices = @transform_7, window_bounds = array<i64: 1, 32>}, {pipeline_mode = #tpu.pipeline_mode<synchronous>, transform_indices = @transform_8, window_bounds = array<i64: 4, 1, 1>}, {pipeline_mode = #tpu.pipeline_mode<synchronous>, transform_indices = @transform_9, window_bounds = array<i64: 1, 32>}, {pipeline_mode = #tpu.pipeline_mode<synchronous>, transform_indices = @transform_10, window_bounds = array<i64: 1, 32>}, {transform_indices = @transform_11, window_bounds = array<i64: 4, 8, 32>}]} {
    %c0 = arith.constant 0 : index
    %c0_0 = arith.constant 0 : index
    %c0_1 = arith.constant 0 : index
    %0 = vector.load %arg1[%c0, %c0_0, %c0_1] : memref<4x8x32xf32, #tpu.memory_space<vmem>>, vector<4x8x32xf32>
    %1 = arith.truncf %0 : vector<4x8x32xf32> to vector<4x8x32xbf16>
    %c0_2 = arith.constant 0 : index
    %c0_3 = arith.constant 0 : index
    %c0_4 = arith.constant 0 : index
    %2 = vector.load %arg2[%c0_2, %c0_3, %c0_4] : memref<4x8x32xbf16, #tpu.memory_space<vmem>>, vector<4x8x32xbf16>
    %c0_5 = arith.constant 0 : index
    %c0_6 = arith.constant 0 : index
    %c0_7 = arith.constant 0 : index
    %3 = vector.load %arg3[%c0_5, %c0_6, %c0_7] : memref<4x8x32xbf16, #tpu.memory_space<vmem>>, vector<4x8x32xbf16>
    %4 = vector.shape_cast %1 : vector<4x8x32xbf16> to vector<4x1x8x32xbf16>
    %5 = vector.shape_cast %4 : vector<4x1x8x32xbf16> to vector<4x1x8x32xbf16>
    %6 = vector.broadcast %5 : vector<4x1x8x32xbf16> to vector<4x4x8x32xbf16>
    %7 = vector.shape_cast %6 : vector<4x4x8x32xbf16> to vector<16x8x32xbf16>
    %8 = vector.shape_cast %2 : vector<4x8x32xbf16> to vector<4x1x8x32xbf16>
    %9 = vector.shape_cast %8 : vector<4x1x8x32xbf16> to vector<4x1x8x32xbf16>
    %10 = vector.broadcast %9 : vector<4x1x8x32xbf16> to vector<4x4x8x32xbf16>
    %11 = vector.shape_cast %10 : vector<4x4x8x32xbf16> to vector<16x8x32xbf16>
    %12 = vector.shape_cast %3 : vector<4x8x32xbf16> to vector<4x1x8x32xbf16>
    %13 = vector.shape_cast %12 : vector<4x1x8x32xbf16> to vector<4x1x8x32xbf16>
    %14 = vector.broadcast %13 : vector<4x1x8x32xbf16> to vector<4x4x8x32xbf16>
    %15 = vector.shape_cast %14 : vector<4x4x8x32xbf16> to vector<16x8x32xbf16>
    %c0_8 = arith.constant 0 : index
    %c0_9 = arith.constant 0 : index
    %c0_10 = arith.constant 0 : index
    %16 = vector.load %arg4[%c0_8, %c0_9, %c0_10] : memref<4x9x32xbf16, #tpu.memory_space<vmem>>, vector<4x9x32xbf16>
    %17 = vector.shape_cast %16 : vector<4x9x32xbf16> to vector<1x4x9x32xbf16>
    %18 = vector.shape_cast %17 : vector<1x4x9x32xbf16> to vector<1x4x9x32xbf16>
    %19 = vector.broadcast %18 : vector<1x4x9x32xbf16> to vector<4x4x9x32xbf16>
    %20 = vector.shape_cast %19 : vector<4x4x9x32xbf16> to vector<16x9x32xbf16>
    %c0_11 = arith.constant 0 : index
    %c0_12 = arith.constant 0 : index
    %c0_13 = arith.constant 0 : index
    %21 = vector.load %arg5[%c0_11, %c0_12, %c0_13] : memref<4x8x32xbf16, #tpu.memory_space<vmem>>, vector<4x8x32xbf16>
    %22 = vector.shape_cast %21 : vector<4x8x32xbf16> to vector<1x4x8x32xbf16>
    %23 = vector.shape_cast %22 : vector<1x4x8x32xbf16> to vector<1x4x8x32xbf16>
    %24 = vector.broadcast %23 : vector<1x4x8x32xbf16> to vector<4x4x8x32xbf16>
    %25 = vector.shape_cast %24 : vector<4x4x8x32xbf16> to vector<16x8x32xbf16>
    %c0_14 = arith.constant 0 : index
    %c0_15 = arith.constant 0 : index
    %c0_16 = arith.constant 0 : index
    %26 = vector.load %arg6[%c0_14, %c0_15, %c0_16] : memref<4x8x32xbf16, #tpu.memory_space<vmem>>, vector<4x8x32xbf16>
    %27 = vector.shape_cast %26 : vector<4x8x32xbf16> to vector<1x4x8x32xbf16>
    %28 = vector.shape_cast %27 : vector<1x4x8x32xbf16> to vector<1x4x8x32xbf16>
    %29 = vector.broadcast %28 : vector<1x4x8x32xbf16> to vector<4x4x8x32xbf16>
    %30 = vector.shape_cast %29 : vector<4x4x8x32xbf16> to vector<16x8x32xbf16>
    %c0_17 = arith.constant 0 : index
    %c0_18 = arith.constant 0 : index
    %c0_19 = arith.constant 0 : index
    %31 = vector.load %arg7[%c0_17, %c0_18, %c0_19] : memref<4x32x8xbf16, #tpu.memory_space<vmem>>, vector<4x32x8xbf16>
    %32 = vector.shape_cast %31 : vector<4x32x8xbf16> to vector<1x4x32x8xbf16>
    %33 = vector.shape_cast %32 : vector<1x4x32x8xbf16> to vector<1x4x32x8xbf16>
    %34 = vector.broadcast %33 : vector<1x4x32x8xbf16> to vector<4x4x32x8xbf16>
    %35 = vector.shape_cast %34 : vector<4x4x32x8xbf16> to vector<16x32x8xbf16>
    %c0_20 = arith.constant 0 : index
    %c0_21 = arith.constant 0 : index
    %c0_22 = arith.constant 0 : index
    %36 = vector.load %arg9[%c0_20, %c0_21, %c0_22] : memref<4x1x1xf32, #tpu.memory_space<vmem>>, vector<4x1x1xf32>
    %37 = vector.shape_cast %36 : vector<4x1x1xf32> to vector<1x4x1x1xf32>
    %38 = vector.shape_cast %37 : vector<1x4x1x1xf32> to vector<1x4x1x1xf32>
    %39 = vector.broadcast %38 : vector<1x4x1x1xf32> to vector<4x4x1x1xf32>
    %40 = vector.shape_cast %39 : vector<4x4x1x1xf32> to vector<16x1x1xf32>
    "tpu.trace_start"() <{level = 10 : i32, message = "gsc,gtc->gst"}> : () -> ()
    %cst = arith.constant dense<0.000000e+00> : vector<16x8x9xf32>
    %41 = tpu.matmul %7, %20, %cst {dimension_numbers = #tpu.dot_dimension_numbers<[2], [2], [1], [1], [0, 0, 0, 1, 1, 1], [0], [0]>} : vector<16x8x32xbf16>, vector<16x9x32xbf16>, vector<16x8x9xf32> -> vector<16x8x9xf32>
    "tpu.trace_stop"() : () -> ()
    "tpu.trace_start"() <{level = 10 : i32, message = "gsc,gdc->gsd"}> : () -> ()
    %cst_23 = arith.constant dense<0.000000e+00> : vector<16x8x8xf32>
    %42 = tpu.matmul %11, %25, %cst_23 {dimension_numbers = #tpu.dot_dimension_numbers<[2], [2], [1], [1], [0, 0, 0, 1, 1, 1], [0], [0]>} : vector<16x8x32xbf16>, vector<16x8x32xbf16>, vector<16x8x8xf32> -> vector<16x8x8xf32>
    %cst_24 = arith.constant dense<0.000000e+00> : vector<16x8x8xf32>
    %43 = tpu.matmul %15, %30, %cst_24 {dimension_numbers = #tpu.dot_dimension_numbers<[2], [2], [1], [1], [0, 0, 0, 1, 1, 1], [0], [0]>} : vector<16x8x32xbf16>, vector<16x8x32xbf16>, vector<16x8x8xf32> -> vector<16x8x8xf32>
    "tpu.trace_stop"() : () -> ()
    %44 = vector.extract_strided_slice %41 {offsets = [0, 0, 8], sizes = [16, 8, 1], strides = [1, 1, 1]} : vector<16x8x9xf32> to vector<16x8x1xf32>
    %45 = vector.broadcast %40 : vector<16x1x1xf32> to vector<16x8x1xf32>
    %46 = arith.addf %44, %45 : vector<16x8x1xf32>
    %47 = arith.negf %46 : vector<16x8x1xf32>
    %48 = math.exp %47 : vector<16x8x1xf32>
    %cst_25 = arith.constant 1.000000e+00 : f32
    %49 = vector.broadcast %cst_25 : f32 to vector<16x8x1xf32>
    %50 = arith.addf %49, %48 : vector<16x8x1xf32>
    %51 = arith.divf %49, %50 : vector<16x8x1xf32>
    %52 = vector.extract_strided_slice %41 {offsets = [0, 0, 0], sizes = [16, 8, 8], strides = [1, 1, 1]} : vector<16x8x9xf32> to vector<16x8x8xf32>
    %cst_26 = arith.constant 0.353553385 : f32
    %53 = vector.broadcast %cst_26 : f32 to vector<16x8x1xf32>
    %54 = arith.mulf %51, %53 : vector<16x8x1xf32>
    %55 = vector.broadcast %54 : vector<16x8x1xf32> to vector<16x8x8xf32>
    %56 = arith.mulf %52, %55 : vector<16x8x8xf32>
    %57 = arith.truncf %56 : vector<16x8x8xf32> to vector<16x8x8xbf16>
    %58 = arith.truncf %42 : vector<16x8x8xf32> to vector<16x8x8xbf16>
    "tpu.trace_start"() <{level = 10 : i32, message = "gqd,gkd->gqk"}> : () -> ()
    %cst_27 = arith.constant dense<0.000000e+00> : vector<16x8x8xf32>
    %59 = tpu.matmul %57, %58, %cst_27 {dimension_numbers = #tpu.dot_dimension_numbers<[2], [2], [1], [1], [0, 0, 0, 1, 1, 1], [0], [0]>} : vector<16x8x8xbf16>, vector<16x8x8xbf16>, vector<16x8x8xf32> -> vector<16x8x8xf32>
    "tpu.trace_stop"() : () -> ()
    %cst_28 = arith.constant dense<0xFF800000> : vector<16x8xf32>
    %60 = vector.multi_reduction <maximumf>, %59, %cst_28 [2] : vector<16x8x8xf32> to vector<16x8xf32>
    %61 = vector.shape_cast %60 : vector<16x8xf32> to vector<16x8x1xf32>
    %62 = vector.broadcast %61 : vector<16x8x1xf32> to vector<16x8x8xf32>
    %63 = arith.subf %59, %62 : vector<16x8x8xf32>
    %64 = math.exp %63 : vector<16x8x8xf32>
    %cst_29 = arith.constant dense<0.000000e+00> : vector<16x8xf32>
    %65 = vector.multi_reduction <add>, %64, %cst_29 [2] : vector<16x8x8xf32> to vector<16x8xf32>
    %66 = vector.shape_cast %65 : vector<16x8xf32> to vector<16x8x1xf32>
    %67 = tpu.reciprocal %66 {approx = true} : vector<16x8x1xf32> -> vector<16x8x1xf32>
    %68 = vector.broadcast %67 : vector<16x8x1xf32> to vector<16x8x8xf32>
    %69 = arith.mulf %64, %68 : vector<16x8x8xf32>
    %70 = arith.truncf %69 : vector<16x8x8xf32> to vector<16x8x8xbf16>
    %71 = arith.truncf %43 : vector<16x8x8xf32> to vector<16x8x8xbf16>
    "tpu.trace_start"() <{level = 10 : i32, message = "gqk,gkd->gqd"}> : () -> ()
    %cst_30 = arith.constant dense<0.000000e+00> : vector<16x8x8xf32>
    %72 = tpu.matmul %70, %71, %cst_30 {dimension_numbers = #tpu.dot_dimension_numbers<[2], [1], [1], [2], [0, 0, 0, 1, 1, 2], [0], [0]>} : vector<16x8x8xbf16>, vector<16x8x8xbf16>, vector<16x8x8xf32> -> vector<16x8x8xf32>
    "tpu.trace_stop"() : () -> ()
    %73 = arith.truncf %72 : vector<16x8x8xf32> to vector<16x8x8xbf16>
    "tpu.trace_start"() <{level = 10 : i32, message = "gsd,ged->gse"}> : () -> ()
    %cst_31 = arith.constant dense<0.000000e+00> : vector<16x8x32xf32>
    %74 = tpu.matmul %73, %35, %cst_31 {dimension_numbers = #tpu.dot_dimension_numbers<[2], [2], [1], [1], [0, 0, 0, 1, 1, 1], [0], [0]>} : vector<16x8x8xbf16>, vector<16x32x8xbf16>, vector<16x8x32xf32> -> vector<16x8x32xf32>
    "tpu.trace_stop"() : () -> ()
    %75 = vector.shape_cast %74 : vector<16x8x32xf32> to vector<4x4x8x32xf32>
    %76 = vector.extract_strided_slice %75 {offsets = [0, 0, 0, 0], sizes = [4, 1, 8, 32], strides = [1, 1, 1, 1]} : vector<4x4x8x32xf32> to vector<4x1x8x32xf32>
    %77 = vector.shape_cast %76 : vector<4x1x8x32xf32> to vector<4x8x32xf32>
    %78 = vector.extract_strided_slice %75 {offsets = [0, 1, 0, 0], sizes = [4, 1, 8, 32], strides = [1, 1, 1, 1]} : vector<4x4x8x32xf32> to vector<4x1x8x32xf32>
    %79 = vector.shape_cast %78 : vector<4x1x8x32xf32> to vector<4x8x32xf32>
    %80 = arith.addf %77, %79 : vector<4x8x32xf32>
    %81 = vector.extract_strided_slice %75 {offsets = [0, 2, 0, 0], sizes = [4, 1, 8, 32], strides = [1, 1, 1, 1]} : vector<4x4x8x32xf32> to vector<4x1x8x32xf32>
    %82 = vector.shape_cast %81 : vector<4x1x8x32xf32> to vector<4x8x32xf32>
    %83 = arith.addf %80, %82 : vector<4x8x32xf32>
    %84 = vector.extract_strided_slice %75 {offsets = [0, 3, 0, 0], sizes = [4, 1, 8, 32], strides = [1, 1, 1, 1]} : vector<4x4x8x32xf32> to vector<4x1x8x32xf32>
    %85 = vector.shape_cast %84 : vector<4x1x8x32xf32> to vector<4x8x32xf32>
    %86 = arith.addf %83, %85 : vector<4x8x32xf32>
    %c0_32 = arith.constant 0 : index
    %c0_33 = arith.constant 0 : index
    %87 = vector.load %arg8[%c0_32, %c0_33] : memref<1x32xf32, #tpu.memory_space<vmem>>, vector<1x32xf32>
    %88 = vector.shape_cast %87 : vector<1x32xf32> to vector<1x1x32xf32>
    %89 = vector.broadcast %88 : vector<1x1x32xf32> to vector<4x8x32xf32>
    %90 = arith.addf %86, %89 : vector<4x8x32xf32>
    %91 = arith.addf %90, %0 : vector<4x8x32xf32>
    %cst_34 = arith.constant dense<0.000000e+00> : vector<4x8xf32>
    %92 = vector.multi_reduction <add>, %91, %cst_34 [2] : vector<4x8x32xf32> to vector<4x8xf32>
    %93 = vector.shape_cast %92 : vector<4x8xf32> to vector<4x8x1xf32>
    %cst_35 = arith.constant 3.200000e+01 : f32
    %94 = vector.broadcast %cst_35 : f32 to vector<4x8x1xf32>
    %95 = arith.divf %93, %94 : vector<4x8x1xf32>
    %96 = vector.broadcast %95 : vector<4x8x1xf32> to vector<4x8x32xf32>
    %97 = arith.subf %91, %96 : vector<4x8x32xf32>
    %98 = arith.mulf %97, %97 : vector<4x8x32xf32>
    %cst_36 = arith.constant dense<0.000000e+00> : vector<4x8xf32>
    %99 = vector.multi_reduction <add>, %98, %cst_36 [2] : vector<4x8x32xf32> to vector<4x8xf32>
    %100 = vector.shape_cast %99 : vector<4x8xf32> to vector<4x8x1xf32>
    %cst_37 = arith.constant 3.200000e+01 : f32
    %101 = vector.broadcast %cst_37 : f32 to vector<4x8x1xf32>
    %102 = arith.divf %100, %101 : vector<4x8x1xf32>
    %103 = vector.broadcast %95 : vector<4x8x1xf32> to vector<4x8x32xf32>
    %104 = arith.subf %91, %103 : vector<4x8x32xf32>
    %cst_38 = arith.constant 9.99999974E-6 : f32
    %105 = vector.broadcast %cst_38 : f32 to vector<4x8x1xf32>
    %106 = arith.addf %102, %105 : vector<4x8x1xf32>
    %107 = math.rsqrt %106 : vector<4x8x1xf32>
    %108 = vector.broadcast %107 : vector<4x8x1xf32> to vector<4x8x32xf32>
    %109 = arith.mulf %104, %108 : vector<4x8x32xf32>
    %c0_39 = arith.constant 0 : index
    %c0_40 = arith.constant 0 : index
    %110 = vector.load %arg10[%c0_39, %c0_40] : memref<1x32xf32, #tpu.memory_space<vmem>>, vector<1x32xf32>
    %111 = vector.shape_cast %110 : vector<1x32xf32> to vector<1x1x32xf32>
    %112 = vector.broadcast %111 : vector<1x1x32xf32> to vector<4x8x32xf32>
    %113 = arith.mulf %109, %112 : vector<4x8x32xf32>
    %c0_41 = arith.constant 0 : index
    %c0_42 = arith.constant 0 : index
    %114 = vector.load %arg11[%c0_41, %c0_42] : memref<1x32xf32, #tpu.memory_space<vmem>>, vector<1x32xf32>
    %115 = vector.shape_cast %114 : vector<1x32xf32> to vector<1x1x32xf32>
    %116 = vector.broadcast %115 : vector<1x1x32xf32> to vector<4x8x32xf32>
    %117 = arith.addf %113, %116 : vector<4x8x32xf32>
    %c0_43 = arith.constant 0 : index
    %c0_44 = arith.constant 0 : index
    %c0_45 = arith.constant 0 : index
    %118 = vector.load %arg12[%c0_43, %c0_44, %c0_45] : memref<4x8x32xf32, #tpu.memory_space<vmem>>, vector<4x8x32xf32>
    tpu.vector_store %arg12[%c0_43, %c0_44, %c0_45], %117 {strides = array<i32>} : memref<4x8x32xf32, #tpu.memory_space<vmem>>, vector<4x8x32xf32>,
    return
  }
  func.func @transform_0(%arg0: i32) -> (i32, i32, i32) {
    %c0_i32 = arith.constant 0 : i32
    %c0_i32_0 = arith.constant 0 : i32
    %c0_i32_1 = arith.constant 0 : i32
    return %arg0, %c0_i32, %c0_i32_0 : i32, i32, i32
  }
  func.func @transform_1(%arg0: i32) -> (i32, i32, i32) {
    %c0_i32 = arith.constant 0 : i32
    %c0_i32_0 = arith.constant 0 : i32
    %c0_i32_1 = arith.constant 0 : i32
    return %arg0, %c0_i32, %c0_i32_0 : i32, i32, i32
  }
  func.func @transform_2(%arg0: i32) -> (i32, i32, i32) {
    %c0_i32 = arith.constant 0 : i32
    %c0_i32_0 = arith.constant 0 : i32
    %c0_i32_1 = arith.constant 0 : i32
    return %arg0, %c0_i32, %c0_i32_0 : i32, i32, i32
  }
  func.func @transform_3(%arg0: i32) -> (i32, i32, i32) {
    %c0_i32 = arith.constant 0 : i32
    %c0_i32_0 = arith.constant 0 : i32
    %c0_i32_1 = arith.constant 0 : i32
    %c0_i32_2 = arith.constant 0 : i32
    return %c0_i32, %c0_i32_0, %c0_i32_1 : i32, i32, i32
  }
  func.func @transform_4(%arg0: i32) -> (i32, i32, i32) {
    %c0_i32 = arith.constant 0 : i32
    %c0_i32_0 = arith.constant 0 : i32
    %c0_i32_1 = arith.constant 0 : i32
    %c0_i32_2 = arith.constant 0 : i32
    return %c0_i32, %c0_i32_0, %c0_i32_1 : i32, i32, i32
  }
  func.func @transform_5(%arg0: i32) -> (i32, i32, i32) {
    %c0_i32 = arith.constant 0 : i32
    %c0_i32_0 = arith.constant 0 : i32
    %c0_i32_1 = arith.constant 0 : i32
    %c0_i32_2 = arith.constant 0 : i32
    return %c0_i32, %c0_i32_0, %c0_i32_1 : i32, i32, i32
  }
  func.func @transform_6(%arg0: i32) -> (i32, i32, i32) {
    %c0_i32 = arith.constant 0 : i32
    %c0_i32_0 = arith.constant 0 : i32
    %c0_i32_1 = arith.constant 0 : i32
    %c0_i32_2 = arith.constant 0 : i32
    return %c0_i32, %c0_i32_0, %c0_i32_1 : i32, i32, i32
  }
  func.func @transform_7(%arg0: i32) -> (i32, i32) {
    %c0_i32 = arith.constant 0 : i32
    %c0_i32_0 = arith.constant 0 : i32
    %c0_i32_1 = arith.constant 0 : i32
    return %c0_i32, %c0_i32_0 : i32, i32
  }
  func.func @transform_8(%arg0: i32) -> (i32, i32, i32) {
    %c0_i32 = arith.constant 0 : i32
    %c0_i32_0 = arith.constant 0 : i32
    %c0_i32_1 = arith.constant 0 : i32
    %c0_i32_2 = arith.constant 0 : i32
    return %c0_i32, %c0_i32_0, %c0_i32_1 : i32, i32, i32
  }
  func.func @transform_9(%arg0: i32) -> (i32, i32) {
    %c0_i32 = arith.constant 0 : i32
    %c0_i32_0 = arith.constant 0 : i32
    %c0_i32_1 = arith.constant 0 : i32
    return %c0_i32, %c0_i32_0 : i32, i32
  }
  func.func @transform_10(%arg0: i32) -> (i32, i32) {
    %c0_i32 = arith.constant 0 : i32
    %c0_i32_0 = arith.constant 0 : i32
    %c0_i32_1 = arith.constant 0 : i32
    return %c0_i32, %c0_i32_0 : i32, i32
  }
  func.func @transform_11(%arg0: i32) -> (i32, i32, i32) {
    %c0_i32 = arith.constant 0 : i32
    %c0_i32_0 = arith.constant 0 : i32
    %c0_i32_1 = arith.constant 0 : i32
    return %arg0, %c0_i32, %c0_i32_0 : i32, i32, i32
  }
}

</mosaic_0001>

<bundles_post_ra>
// kernel: tpu_custom_call.1
= control target key start
LH: loop header
LB: loop body
LE: loop exit
PB: predicated region body
PF: predicated region fallthrough
CT: control target
= control target key end

     0   :  { %16 = vsyncpa [#allocation3], 0  ;;  %s8072_s0 = inlined_call_operand.vmem [shape: f32[8,8,32], index: 0, kind: input, shape index: {}]   ;;  %s8073_s1 = inlined_call_operand.vmem [shape: bf16[8,8,32], index: 1, kind: input, shape index: {}]   ;;  %s8074_s2 = inlined_call_operand.vmem [shape: bf16[8,8,32], index: 2, kind: input, shape index: {}]   ;;  %s8075_s3 = inlined_call_operand.vmem [shape: bf16[4,9,32], index: 3, kind: input, shape index: {}]   ;;  %s8076_s4 = inlined_call_operand.hbm [shape: bf16[4,8,32], index: 4, kind: input, shape index: {}]   ;;  %s8077_s5 = inlined_call_operand.hbm [shape: bf16[4,8,32], index: 5, kind: input, shape index: {}]   ;;  %s8078_s6 = inlined_call_operand.vmem [shape: bf16[4,32,8], index: 6, kind: input, shape index: {}]   ;;  %s8079_s7 = inlined_call_operand.vmem [shape: f32[1,32], index: 7, kind: input, shape index: {}]   ;;  %s8080_s8 = inlined_call_operand.vmem [shape: f32[4,1,1], index: 8, kind: input, shape index: {}]   ;;  %s8081_s9 = inlined_call_operand.vmem [shape: f32[1,32], index: 9, kind: input, shape index: {}]   ;;  %s8082_s10 = inlined_call_operand.vmem [shape: f32[1,32], index: 10, kind: input, shape index: {}]   ;;  %s8083_s11 = inlined_call_operand.hbm [shape: f32[8,8,32], index: 11, kind: output, shape index: {}]  }
   0x1   :  { %17 = vsyncpa [#allocation6], 0 }
   0x2   :  { %18 = vsyncpa [#allocation4], 0 }
   0x3   :  { %20 = vsyncpa [#allocation4 + $0x1], 0  ;;  %s6881_s17 = smov 0   ;;  %s6883_s18 = smov 0  }
   0x4   :  { %s6885_s19 = smov 0   ;;  %s6887_s20 = smov 0  }
   0x5 LB: > { %8092 = sst [smem:[#allocation11_spill]] %s6797_s17  ;;  %s6902_s21 = sadd.s32 4294967295, %s6809_s20   ;;  %s6809_s20 = sphi %s6887_s20, %s8110_s20   ;;  %s6805_s19 = sphi %s6885_s19, %s8112_s19   ;;  %s6801_s18 = sphi %s6883_s18, %s8114_s18   ;;  %s6797_s17 = sphi %s6881_s17, %s8113_s17  }
   0x6   : > { %8093 = sst [smem:[#allocation12_spill]] %s6805_s19  ;;  %s5494_s22 = sadd.s32 4294967294, %s6809_s20  }
   0x7   : > { %s6906_s23 = sadd.s32 1, %s6809_s20   ;;  %s279_s24 = sadd.s32 1, %s6805_s19 }
   0x8   : > { %8094 = sst [smem:[#allocation13_spill]] %s6906_s23  ;;  %s276_s25 = ssub.s32 %s6809_s20, %s6906_s23 }
   0x9   : > { %p289_p0 = scmp.ne.s32.totalorder %s6805_s19, %s6801_s18  ;;  %p277_p1 = scmp.eq.s32.totalorder %s276_s25, 0 }
   0xa   : > { %p290_p2 = scmp.eq.s32.totalorder %s6902_s21, 1  ;;  %p295_p3 = scmp.ne.s32.totalorder %s6801_s18, %s6797_s17 }
   0xb   : > { %p296_p4 = scmp.eq.s32.totalorder %s5494_s22, 1  ;;  %p5495_p7 = scmp.ge.s32.totalorder %s6809_s20, 1 }
   0xc   : > { %s6917_s26 = scalar_select %p277_p1, %s6805_s19, %s279_s24  }
   0xd   : > { %p6919_p5 = por %p290_p2, %p289_p0  ;;  %p6923_p6 = por %p296_p4, %p295_p3 }
   0xe   : > { %8095 = sst [smem:[#allocation14_spill]] %s6917_s26  ;;  %p303_p8 = scmp.lt.s32.totalorder %s6809_s20, 3 }
   0xf   : > { %s8096_s27 = scalar_select %p6919_p5, 1, 0 }
  0x10   : > { %s8097_s28 = scalar_select %p6923_p6, 1, 0 }
  0x11   : > { %p8085_p9 = scmp.eq.s32.totalorder %s6902_s21, 0  ;;  %p6930_p10 = pnand %p5495_p7, %p303_p8 }
  0x12   : > { %8098 = sst [smem:[#allocation15_spill]] %s8097_s28  ;;  %s6811_s30 = smov [#allocation2]  }
  0x13   : > { %s8099_s29 = scalar_select %p6930_p10, 1, 0 }
  0x14   : > { %s318_s12 = sshll.u32 %s6811_s30, 4  ;;  %p6472_p11 = pneg %p6930_p10  ;;  %s319_s12 = int_to_ptr.vmem [resolvable:$true] %s318_s12 }
  0x15   : > { %s6812_s14 = smov [#allocation5]   ;;  %s6683_s24 = scalar_lea.hbm %s8076_s4, 256 }
  0x16   : > { %p6938_p12 = pnand %p8085_p9, %p6472_p11  ;;  %s331_s15 = sshll.u32 %s6812_s14, 4  ;;  %s6942_s15 = int_to_ptr.vmem [resolvable:$true] %s331_s15 }
  0x17   : > { %p6684_p13 = scmp.ne.s32.totalorder %s8076_s4, %s6683_s24  ;;  %p6690_p3 = scmp.lt.u32.totalorder %s6683_s24, %s8076_s4 }
  0x18   : > { %p6685_p0 = pneg %p6938_p12 }
  0x1a   : > { %p6686_p1 = pnand %p6685_p0, %p6684_p13 }
  0x1c   : > { %p6687_p2 = pneg %p6686_p1 }
  0x1e   : > { %p6692_p4 = pnand %p6690_p3, %p6687_p2 }
  0x20   : > { %6695 = shalt.err (!%p6692_p4)
}
  0x21   : > { %s6696_s14 = scalar_lea.vmem %s319_s12, 256  ;;  %p6704_p9 = scmp.lt.s32.totalorder %s319_s12, %s319_s12 }
  0x22   : > { %p6697_p7 = scmp.ne.s32.totalorder %s319_s12, %s6696_s14  ;;  %p6705_p6 = scmp.lt.s32.totalorder %s6696_s14, %s6696_s14 }
  0x24   : > { %p6699_p8 = pnand %p6697_p7, %p6685_p0  ;;  %p6706_p5 = por %p6705_p6, %p6704_p9 }
  0x26   : > { %p6700_p11 = pneg %p6699_p8 }
  0x28   : > { %p6707_p10 = pnand %p6706_p5, %p6700_p11 }
  0x2a   : > { %6710 = shalt.err (!%p6707_p10)
}
  0x2b   : > { %s6813_s16 = smov 64   ;;  %s6814_s22 = smov 4  }
  0x2c   : > { %6475 = dma.hbm_to_vmem [thread:$0]  (!%p6938_p12), %s8076_s4, 256, %s319_s12, [#allocation3], %s6813_s16, %s6813_s16, %s6814_s22  }
  0x2d   : > { %s6711_s30 = scalar_lea.hbm %s8077_s5, 256 }
  0x2e   : > { %p6712_p13 = scmp.ne.s32.totalorder %s8077_s5, %s6711_s30  ;;  %p6718_p9 = scmp.lt.u32.totalorder %s6711_s30, %s8077_s5 }
  0x30   : > { %p6714_p5 = pnand %p6712_p13, %p6685_p0 }
  0x32   : > { %p6715_p6 = pneg %p6714_p5 }
  0x34   : > { %p6720_p10 = pnand %p6718_p9, %p6715_p6 }
  0x36   : > { %6723 = shalt.err (!%p6720_p10)
}
  0x37   : > { %s6724_s12 = scalar_lea.vmem %s6942_s15, 256  ;;  %p6732_p4 = scmp.lt.s32.totalorder %s6942_s15, %s6942_s15 }
  0x38   : > { %p6725_p1 = scmp.ne.s32.totalorder %s6942_s15, %s6724_s12  ;;  %p6733_p7 = scmp.lt.s32.totalorder %s6724_s12, %s6724_s12 }
  0x3a   : > { %p6727_p2 = pnand %p6725_p1, %p6685_p0  ;;  %p6734_p8 = por %p6733_p7, %p6732_p4 }
  0x3c   : > { %p6728_p3 = pneg %p6727_p2 }
  0x3e   : > { %p6735_p11 = pnand %p6734_p8, %p6728_p3 }
  0x40   : > { %6738 = shalt.err (!%p6735_p11)
}
  0x41   : > { %6478 = dma.hbm_to_vmem [thread:$0]  (!%p6938_p12), %s8077_s5, 256, %s6942_s15, [#allocation6], %s6813_s16, %s6813_s16, %s6814_s22  }
  0x42   : > { %p8101_p13 = scmp.ne.s32.totalorder %s8099_s29, 0 }
  0x43   : > { %p8102_p5 = scmp.eq.s32.totalorder (!%p8101_p13), %s6902_s21, 0 }
  0x44   : > { %389 = sbr.rel (%p8101_p13) target bundleno = 1932 (0x78c), region = 64 }
  0x4b   : > { %6784 = dma.done.wait (%p8102_p5), [#allocation3], 256   ;;  %p8103_p0 = pmov %p8102_p5 }
  0x4d   : > { %6786 = vsyncadd (%p8103_p0), [#allocation3], 4294967040  ;;  %p8104_p6 = pmov %p8103_p0 }
  0x4e   : > { %p8105_p9 = pmov %p8103_p0 }
  0x4f   : > { %6788 = dma.done.wait (%p8104_p6), [#allocation6], 256  }
  0x50   : > { %6790 = vsyncadd (%p8105_p9), [#allocation6], 4294967040  ;;  %s5503_s28 = sshll.u32 %s6902_s21, 2  ;;  %v6815_v0 = vmov 0.0   ;;  %vm6816_vm0 = vmmov 0   ;;  %vm520_vm1 = vcmask 261120  }
  0x51   : > { %5854 = vmatprep.subr.bf16.mxu0 %v6815_v0  ;;  %5860 = vmatprep.subr.bf16.mxu1 %v6815_v0  ;;  %p444_p12 = scmp.lt.s32.totalorder %s5503_s28, 7  ;;  %v6531_v1 = vld [vmem:[%s8075_s3] sm:$0x1f]   ;;  %v6532_v2 = vld [vmem:[%s8075_s3 + $0x8] sm:$0x1f]   ;;  %v6818_v33 = vmov 8  }
  0x52   : > { %5856 = vmatprep.mubr.msk.bf16.mxu0 %vm6816_vm0, %v6815_v0  ;;  %5862 = vmatprep.mubr.msk.bf16.mxu1 %vm6816_vm0, %v6815_v0  ;;  %v7023_v3 = vsel %vm520_vm1, %v6531_v1, 0  ;;  %v7027_v4 = vsel %vm520_vm1, %v6532_v2, 0  ;;  %v6533_v6 = vld [vmem:[%s8075_s3 + $0x10] sm:$0x1f]   ;;  %v6534_v7 = vld [vmem:[%s8075_s3 + $0x18] sm:$0x1f]  }
  0x53   : > { %s8116_s28 = smov (!%p444_p12, %s5503_s28), 7  ;;  %5855 = vmatpush3.bf16.xpose.msra.mxu0 %v7023_v3  ;;  %5861 = vmatpush3.bf16.xpose.msra.mxu1 %v7027_v4  ;;  %v5561_v8 = vld [vmem:[%s8080_s8] ss:$0 sm:$0xff]  ;;  %v5563_v10 = vld [vmem:[%s8080_s8 + $0x2] ss:$0 sm:$0xff]  ;;  %v621_v12 = vsel %vm520_vm1, %v6533_v6, 0 }
  0x54   : > { %s5504_s29 = sshll.u32 %s8116_s28, 3  ;;  %5866 = vmatprep.subr.bf16.mxu0 %v6815_v0  ;;  %5872 = vmatprep.subr.bf16.mxu1 %v6815_v0  ;;  %v5562_v11 = vld [vmem:[%s8080_s8 + $0x1] ss:$0 sm:$0xff]  ;;  %v669_v13 = vsel %vm520_vm1, %v6534_v7, 0  ;;  %v5564_v14 = vld [vmem:[%s8080_s8 + $0x3] ss:$0 sm:$0xff] }
  0x55   : > { %s7017_s19 = scalar_lea.vmem %s8072_s0, %s5504_s29  ;;  %s6817_s29 = smov 8   ;;  %v487_v21 = vld [vmem:[#allocation2] sm:$0xf]  ;;  %v488_v22 = vld [vmem:[#allocation2 + $0x4] sm:$0xf]  ;;  %6530 = vset.pattern.permute.xlu1 %v6818_v33  ;;  %6529 = vset.pattern.permute.xlu0 %v6818_v33  ;;  %vm2816_vm2 = vcmask 64512  }
  0x56   : > { %v463_v5 = vld [vmem:[%s7017_s19] sm:$0xff]  ;;  %2548 = vrot.lane.b32.xlu0 %v5561_v8, %s6817_s29  ;;  %2552 = vrot.lane.b32.xlu1 %v5563_v10, %s6817_s29  ;;  %v464_v15 = vld [vmem:[%s7017_s19 + $0x8] sm:$0xff]  ;;  %v1204_v23 = vsel %vm520_vm1, %v487_v21, 0  ;;  %v1247_v24 = vsel %vm520_vm1, %v488_v22, 0  ;;  %s5506_s25 = sshll.u32 %s8116_s28, 2  ;;  %vm3764_vm3 = vcmask 1043456  }
  0x57   : > { %v467_v9 = vpack.c.bf16 %v463_v5, %v463_v5  ;;  %v468_v16 = vpack.c.bf16 %v464_v15, %v464_v15  ;;  %v465_v17 = vld [vmem:[%s7017_s19 + $0x10] sm:$0xff]  ;;  %v466_v19 = vld [vmem:[%s7017_s19 + $0x18] sm:$0xff]  ;;  %s7134_s12 = scalar_lea.vmem %s8073_s1, %s5506_s25  ;;  %v489_v25 = vld [vmem:[#allocation2 + $0x8] sm:$0xf]  ;;  %s7221_s13 = scalar_lea.vmem %s8074_s2, %s5506_s25 }
  0x58   : > { %v469_v18 = vpack.c.bf16 %v465_v17, %v465_v17  ;;  %v470_v20 = vpack.c.bf16 %v466_v19, %v466_v19  ;;  %v490_v26 = vld [vmem:[#allocation2 + $0xc] sm:$0xf]  ;;  %v471_v27 = vld [vmem:[%s7134_s12] sm:$0xf]  ;;  %v1290_v28 = vsel %vm520_vm1, %v489_v25, 0  ;;  %s5645_s23 = sshll.u32 %s6902_s21, 9 }
  0x59   : > { %v1333_v29 = vsel %vm520_vm1, %v490_v26, 0  ;;  %v472_v30 = vld [vmem:[%s7134_s12 + $0x4] sm:$0xf]  ;;  %v473_v31 = vld [vmem:[%s7134_s12 + $0x8] sm:$0xf]  ;;  %s8022_s16 = scalar_lea.hbm %s8083_s11, %s5645_s23  ;;  %p8106_p1 = scmp.ne.s32.totalorder %s8096_s27, 0 }
  0x5a   : > { %5857 = vmatmul.mubr.msk.bf16.vlgmr.msra.gmra.mrb[0].mxu0 %vm520_vm1, %v467_v9  ;;  %2550 = vrot.lane.b32.xlu0 %v5562_v11, %s6817_s29  ;;  %v474_v32 = vld [vmem:[%s7134_s12 + $0xc] sm:$0xf]  ;;  %v491_v34 = vld [vmem:[#allocation5] sm:$0xf]  ;;  %v492_v35 = vld [vmem:[#allocation5 + $0x4] sm:$0xf] }
  0x5b   : > { %5863 = vmatmul.mubr.msk.bf16.vlgmr.msra.gmra.mrb[0].mxu1 %vm520_vm1, %v467_v9  ;;  %5867 = vmatpush3.bf16.xpose.msra.mxu0 %v621_v12  ;;  %v7209_v36 = vsel %vm520_vm1, %v491_v34, 0  ;;  %v7212_v37 = vsel %vm520_vm1, %v492_v35, 0  ;;  %v493_v38 = vld [vmem:[#allocation5 + $0x8] sm:$0xf]  ;;  %v494_v39 = vld [vmem:[#allocation5 + $0xc] sm:$0xf] }
  0x5c   : > { %5873 = vmatpush3.bf16.xpose.msra.mxu1 %v669_v13  ;;  %5868 = vmatprep.mubr.msk.bf16.mxu0 %vm6816_vm0, %v6815_v0  ;;  %v475_v40 = vld [vmem:[%s7221_s13] sm:$0xf]  ;;  %v7227_v41 = vsel %vm520_vm1, %v493_v38, 0  ;;  %v7230_v42 = vsel %vm520_vm1, %v494_v39, 0  ;;  %v476_v43 = vld [vmem:[%s7221_s13 + $0x4] sm:$0xf] }
  0x5d   : > { %5874 = vmatprep.mubr.msk.bf16.mxu1 %vm6816_vm0, %v6815_v0  ;;  %5878 = vmatprep.subr.bf16.mxu0 %v6815_v0  ;;  %v477_v45 = vld [vmem:[%s7221_s13 + $0x8] sm:$0xf]  ;;  %v478_v10 = vld [vmem:[%s7221_s13 + $0xc] sm:$0xf]  ;;  %s6819_s21 = smov [#allocation7]  }
  0x5e   : > { %5884 = vmatprep.subr.bf16.mxu1 %v6815_v0  ;;  %2554 = vrot.lane.b32.xlu1 %v5564_v14, %s6817_s29  ;;  %s6743_s24 = sshll.u32 %s6819_s21, 4  ;;  %s6744_s24 = int_to_ptr.vmem [resolvable:$false] %s6743_s24 }
  0x5f   : > { %s6745_s25 = scalar_lea.vmem %s6744_s24, 1024 }
  0x62   : > { %5869 = vmatmul.mubr.msk.bf16.vlgmr.msra.gmra.mrb[4].mxu0 %vm520_vm1, %v467_v9 }
  0x63   : > { %5875 = vmatmul.mubr.msk.bf16.vlgmr.msra.gmra.mrb[4].mxu1 %vm520_vm1, %v467_v9  ;;  %5879 = vmatpush3.bf16.xpose.msra.mxu0 %v7023_v3 }
  0x64   : > { %5885 = vmatpush3.bf16.xpose.msra.mxu1 %v7027_v4  ;;  %5880 = vmatprep.mubr.msk.bf16.mxu0 %vm6816_vm0, %v6815_v0 }
  0x65   : > { %5886 = vmatprep.mubr.msk.bf16.mxu1 %vm6816_vm0, %v6815_v0  ;;  %5890 = vmatprep.subr.bf16.mxu0 %v6815_v0 }
  0x66   : > { %5896 = vmatprep.subr.bf16.mxu1 %v6815_v0 }
  0x6a   : > { %5881 = vmatmul.mubr.msk.bf16.vlgmr.msra.gmra.mrb[8].mxu0 %vm520_vm1, %v468_v16 }
  0x6b   : > { %5887 = vmatmul.mubr.msk.bf16.vlgmr.msra.gmra.mrb[8].mxu1 %vm520_vm1, %v468_v16  ;;  %5891 = vmatpush3.bf16.xpose.msra.mxu0 %v621_v12 }
  0x6c   : > { %5897 = vmatpush3.bf16.xpose.msra.mxu1 %v669_v13  ;;  %5892 = vmatprep.mubr.msk.bf16.mxu0 %vm6816_vm0, %v6815_v0 }
  0x6d   : > { %5898 = vmatprep.mubr.msk.bf16.mxu1 %vm6816_vm0, %v6815_v0  ;;  %5902 = vmatprep.subr.bf16.mxu0 %v6815_v0 }
  0x6e   : > { %5908 = vmatprep.subr.bf16.mxu1 %v6815_v0 }
  0x72   : > { %5893 = vmatmul.mubr.msk.bf16.vlgmr.msra.gmra.mrb[12].mxu0 %vm520_vm1, %v468_v16 }
  0x73   : > { %5899 = vmatmul.mubr.msk.bf16.vlgmr.msra.gmra.mrb[12].mxu1 %vm520_vm1, %v468_v16  ;;  %5903 = vmatpush3.bf16.xpose.msra.mxu0 %v7023_v3 }
  0x74   : > { %5909 = vmatpush3.bf16.xpose.msra.mxu1 %v7027_v4  ;;  %5904 = vmatprep.mubr.msk.bf16.mxu0 %vm6816_vm0, %v6815_v0 }
  0x75   : > { %5910 = vmatprep.mubr.msk.bf16.mxu1 %vm6816_vm0, %v6815_v0  ;;  %5914 = vmatprep.subr.bf16.mxu0 %v6815_v0 }
  0x76   : > { %5920 = vmatprep.subr.bf16.mxu1 %v6815_v0 }
  0x7a   : > { %5905 = vmatmul.mubr.msk.bf16.vlgmr.msra.gmra.mrb[16].mxu0 %vm520_vm1, %v469_v18 }
  0x7b   : > { %5911 = vmatmul.mubr.msk.bf16.vlgmr.msra.gmra.mrb[16].mxu1 %vm520_vm1, %v469_v18  ;;  %5915 = vmatpush3.bf16.xpose.msra.mxu0 %v621_v12 }
  0x7c   : > { %5921 = vmatpush3.bf16.xpose.msra.mxu1 %v669_v13  ;;  %5916 = vmatprep.mubr.msk.bf16.mxu0 %vm6816_vm0, %v6815_v0 }
  0x7d   : > { %5922 = vmatprep.mubr.msk.bf16.mxu1 %vm6816_vm0, %v6815_v0  ;;  %5926 = vmatprep.subr.bf16.mxu0 %v6815_v0 }
  0x7e   : > { %5932 = vmatprep.subr.bf16.mxu1 %v6815_v0 }
  0x82   : > { %5917 = vmatmul.mubr.msk.bf16.vlgmr.msra.gmra.mrb[20].mxu0 %vm520_vm1, %v469_v18 }
  0x83   : > { %5923 = vmatmul.mubr.msk.bf16.vlgmr.msra.gmra.mrb[20].mxu1 %vm520_vm1, %v469_v18  ;;  %5927 = vmatpush3.bf16.xpose.msra.mxu0 %v7023_v3 }
  0x84   : > { %5933 = vmatpush3.bf16.xpose.msra.mxu1 %v7027_v4  ;;  %5928 = vmatprep.mubr.msk.bf16.mxu0 %vm6816_vm0, %v6815_v0 }
  0x85   : > { %5934 = vmatprep.mubr.msk.bf16.mxu1 %vm6816_vm0, %v6815_v0  ;;  %5938 = vmatprep.subr.bf16.mxu0 %v6815_v0 }
  0x86   : > { %5944 = vmatprep.subr.bf16.mxu1 %v6815_v0 }
  0x8a   : > { %5929 = vmatmul.mubr.msk.bf16.vlgmr.msra.gmra.mrb[24].mxu0 %vm520_vm1, %v470_v20 }
  0x8b   : > { %5935 = vmatmul.mubr.msk.bf16.vlgmr.msra.gmra.mrb[24].mxu1 %vm520_vm1, %v470_v20  ;;  %5939 = vmatpush3.bf16.xpose.msra.mxu0 %v621_v12 }
  0x8c   : > { %5945 = vmatpush3.bf16.xpose.msra.mxu1 %v669_v13  ;;  %5940 = vmatprep.mubr.msk.bf16.mxu0 %vm6816_vm0, %v6815_v0 }
  0x8d   : > { %5946 = vmatprep.mubr.msk.bf16.mxu1 %vm6816_vm0, %v6815_v0  ;;  %5950 = vmatprep.subr.bf16.mxu0 %v6815_v0 }
  0x8e   : > { %5956 = vmatprep.subr.bf16.mxu1 %v6815_v0 }
  0x92   : > { %5941 = vmatmul.mubr.msk.bf16.vlgmr.msra.gmra.mrb[28].mxu0 %vm520_vm1, %v470_v20 }
  0x93   : > { %5947 = vmatmul.mubr.msk.bf16.vlgmr.msra.gmra.mrb[28].mxu1 %vm520_vm1, %v470_v20  ;;  %5951 = vmatpush3.bf16.xpose.msra.mxu0 %v1204_v23 }
  0x94   : > { %5957 = vmatpush3.bf16.xpose.msra.mxu1 %v1247_v24  ;;  %5952 = vmatprep.mubr.msk.bf16.mxu0 %vm6816_vm0, %v6815_v0 }
  0x95   : > { %5958 = vmatprep.mubr.msk.bf16.mxu1 %vm6816_vm0, %v6815_v0  ;;  %5962 = vmatprep.subr.bf16.mxu0 %v6815_v0 }
  0x96   : > { %5968 = vmatprep.subr.bf16.mxu1 %v6815_v0 }
  0x9a   : > { %5953 = vmatmul.mubr.msk.bf16.vlgmr.msra.gmra.mrb[32].mxu0 %vm520_vm1, %v471_v27 }
  0x9b   : > { %5959 = vmatmul.mubr.msk.bf16.vlgmr.msra.gmra.mrb[32].mxu1 %vm520_vm1, %v471_v27  ;;  %5963 = vmatpush3.bf16.xpose.msra.mxu0 %v1290_v28 }
  0x9c   : > { %5969 = vmatpush3.bf16.xpose.msra.mxu1 %v1333_v29  ;;  %5964 = vmatprep.mubr.msk.bf16.mxu0 %vm6816_vm0, %v6815_v0 }
  0x9d   : > { %5970 = vmatprep.mubr.msk.bf16.mxu1 %vm6816_vm0, %v6815_v0  ;;  %5974 = vmatprep.subr.bf16.mxu0 %v6815_v0 }
  0x9e   : > { %5980 = vmatprep.subr.bf16.mxu1 %v6815_v0 }
  0xa2   : > { %5965 = vmatmul.mubr.msk.bf16.vlgmr.msra.gmra.mrb[36].mxu0 %vm520_vm1, %v471_v27 }
  0xa3   : > { %5971 = vmatmul.mubr.msk.bf16.vlgmr.msra.gmra.mrb[36].mxu1 %vm520_vm1, %v471_v27  ;;  %5975 = vmatpush3.bf16.xpose.msra.mxu0 %v1204_v23 }
  0xa4   : > { %5981 = vmatpush3.bf16.xpose.msra.mxu1 %v1247_v24  ;;  %5976 = vmatprep.mubr.msk.bf16.mxu0 %vm6816_vm0, %v6815_v0 }
  0xa5   : > { %5982 = vmatprep.mubr.msk.bf16.mxu1 %vm6816_vm0, %v6815_v0  ;;  %5986 = vmatprep.subr.bf16.mxu0 %v6815_v0 }
  0xa6   : > { %5992 = vmatprep.subr.bf16.mxu1 %v6815_v0 }
  0xaa   : > { %5977 = vmatmul.mubr.msk.bf16.vlgmr.msra.gmra.mrb[40].mxu0 %vm520_vm1, %v472_v30 }
  0xab   : > { %5983 = vmatmul.mubr.msk.bf16.vlgmr.msra.gmra.mrb[40].mxu1 %vm520_vm1, %v472_v30  ;;  %5987 = vmatpush3.bf16.xpose.msra.mxu0 %v1290_v28 }
  0xac   : > { %5993 = vmatpush3.bf16.xpose.msra.mxu1 %v1333_v29  ;;  %5988 = vmatprep.mubr.msk.bf16.mxu0 %vm6816_vm0, %v6815_v0 }
  0xad   : > { %5994 = vmatprep.mubr.msk.bf16.mxu1 %vm6816_vm0, %v6815_v0  ;;  %5998 = vmatprep.subr.bf16.mxu0 %v6815_v0 }
  0xae   : > { %6004 = vmatprep.subr.bf16.mxu1 %v6815_v0 }
  0xb2   : > { %5989 = vmatmul.mubr.msk.bf16.vlgmr.msra.gmra.mrb[44].mxu0 %vm520_vm1, %v472_v30 }
  0xb3   : > { %5995 = vmatmul.mubr.msk.bf16.vlgmr.msra.gmra.mrb[44].mxu1 %vm520_vm1, %v472_v30  ;;  %5999 = vmatpush3.bf16.xpose.msra.mxu0 %v1204_v23 }
  0xb4   : > { %6005 = vmatpush3.bf16.xpose.msra.mxu1 %v1247_v24  ;;  %6000 = vmatprep.mubr.msk.bf16.mxu0 %vm6816_vm0, %v6815_v0 }
  0xb5   : > { %6006 = vmatprep.mubr.msk.bf16.mxu1 %vm6816_vm0, %v6815_v0  ;;  %6010 = vmatprep.subr.bf16.mxu0 %v6815_v0 }
  0xb6   : > { %6016 = vmatprep.subr.bf16.mxu1 %v6815_v0 }
  0xba   : > { %6001 = vmatmul.mubr.msk.bf16.vlgmr.msra.gmra.mrb[48].mxu0 %vm520_vm1, %v473_v31 }
  0xbb   : > { %6007 = vmatmul.mubr.msk.bf16.vlgmr.msra.gmra.mrb[48].mxu1 %vm520_vm1, %v473_v31  ;;  %6011 = vmatpush3.bf16.xpose.msra.mxu0 %v1290_v28 }
  0xbc   : > { %6017 = vmatpush3.bf16.xpose.msra.mxu1 %v1333_v29  ;;  %6012 = vmatprep.mubr.msk.bf16.mxu0 %vm6816_vm0, %v6815_v0 }
  0xbd   : > { %6018 = vmatprep.mubr.msk.bf16.mxu1 %vm6816_vm0, %v6815_v0  ;;  %6022 = vmatprep.subr.bf16.mxu0 %v6815_v0 }
  0xbe   : > { %6028 = vmatprep.subr.bf16.mxu1 %v6815_v0 }
  0xc2   : > { %6013 = vmatmul.mubr.msk.bf16.vlgmr.msra.gmra.mrb[52].mxu0 %vm520_vm1, %v473_v31 }
  0xc3   : > { %6019 = vmatmul.mubr.msk.bf16.vlgmr.msra.gmra.mrb[52].mxu1 %vm520_vm1, %v473_v31  ;;  %6023 = vmatpush3.bf16.xpose.msra.mxu0 %v1204_v23 }
  0xc4   : > { %6029 = vmatpush3.bf16.xpose.msra.mxu1 %v1247_v24  ;;  %6024 = vmatprep.mubr.msk.bf16.mxu0 %vm6816_vm0, %v6815_v0 }
  0xc5   : > { %6030 = vmatprep.mubr.msk.bf16.mxu1 %vm6816_vm0, %v6815_v0  ;;  %6034 = vmatprep.subr.bf16.mxu0 %v6815_v0 }
  0xc6   : > { %6040 = vmatprep.subr.bf16.mxu1 %v6815_v0 }
  0xc8   : > { %v7263_v44 = vpop.permute.xlu0 %2548  ;;  %v7280_v48 = vpop.permute.xlu1 %2552 }
  0xca   : > { %6025 = vmatmul.mubr.msk.bf16.vlgmr.msra.gmra.mrb[56].mxu0 %vm520_vm1, %v474_v32 }
  0xcb   : > { %6031 = vmatmul.mubr.msk.bf16.vlgmr.msra.gmra.mrb[56].mxu1 %vm520_vm1, %v474_v32  ;;  %6035 = vmatpush3.bf16.xpose.msra.mxu0 %v1290_v28 }
  0xcc   : > { %6041 = vmatpush3.bf16.xpose.msra.mxu1 %v1333_v29  ;;  %6036 = vmatprep.mubr.msk.bf16.mxu0 %vm6816_vm0, %v6815_v0  ;;  %v7276_v46 = vpop.permute.xlu0 %2550 }
  0xcd   : > { %6042 = vmatprep.mubr.msk.bf16.mxu1 %vm6816_vm0, %v6815_v0  ;;  %6046 = vmatprep.subr.bf16.mxu0 %v6815_v0 }
  0xce   : > { %6052 = vmatprep.subr.bf16.mxu1 %v6815_v0 }
  0xd0   : > { %v7298_v60 = vpop.permute.xlu1 %2554 }
  0xd2   : > { %6037 = vmatmul.mubr.msk.bf16.vlgmr.msra.gmra.mrb[60].mxu0 %vm520_vm1, %v474_v32 }
  0xd3   : > { %6043 = vmatmul.mubr.msk.bf16.vlgmr.msra.gmra.mrb[60].mxu1 %vm520_vm1, %v474_v32  ;;  %6048 = vmatprep.mubr.msk.bf16.mxu0 %vm6816_vm0, %v6815_v0 }
  0xd4   : > { %6054 = vmatprep.mubr.msk.bf16.mxu1 %vm6816_vm0, %v6815_v0  ;;  %6047 = vmatpush3.bf16.xpose.msra.mxu0 %v7209_v36 }
  0xd5   : > { %6053 = vmatpush3.bf16.xpose.msra.mxu1 %v7212_v37  ;;  %6058 = vmatprep.subr.bf16.mxu0 %v6815_v0 }
  0xd6   : > { %6064 = vmatprep.subr.bf16.mxu1 %v6815_v0 }
  0xdb   : > { %6049 = vmatmul.mubr.msk.bf16.vlgmr.msra.gmra.mrb[64].mxu0 %vm520_vm1, %v475_v40 }
  0xdc   : > { %6055 = vmatmul.mubr.msk.bf16.vlgmr.msra.gmra.mrb[64].mxu1 %vm520_vm1, %v475_v40  ;;  %6059 = vmatpush3.bf16.xpose.msra.mxu0 %v7227_v41 }
  0xdd   : > { %6065 = vmatpush3.bf16.xpose.msra.mxu1 %v7230_v42  ;;  %6060 = vmatprep.mubr.msk.bf16.mxu0 %vm6816_vm0, %v6815_v0 }
  0xde   : > { %6070 = vmatprep.subr.bf16.mxu0 %v6815_v0  ;;  %6066 = vmatprep.mubr.msk.bf16.mxu1 %vm6816_vm0, %v6815_v0 }
  0xdf   : > { %6076 = vmatprep.subr.bf16.mxu1 %v6815_v0 }
  0xe3   : > { %6061 = vmatmul.mubr.msk.bf16.vlgmr.msra.gmra.mrb[68].mxu0 %vm520_vm1, %v475_v40 }
  0xe4   : > { %6067 = vmatmul.mubr.msk.bf16.vlgmr.msra.gmra.mrb[68].mxu1 %vm520_vm1, %v475_v40  ;;  %6071 = vmatpush3.bf16.xpose.msra.mxu0 %v7209_v36 }
  0xe5   : > { %6077 = vmatpush3.bf16.xpose.msra.mxu1 %v7212_v37  ;;  %6072 = vmatprep.mubr.msk.bf16.mxu0 %vm6816_vm0, %v6815_v0 }
  0xe6   : > { %6082 = vmatprep.subr.bf16.mxu0 %v6815_v0  ;;  %6078 = vmatprep.mubr.msk.bf16.mxu1 %vm6816_vm0, %v6815_v0 }
  0xe7   : > { %6088 = vmatprep.subr.bf16.mxu1 %v6815_v0 }
  0xeb   : > { %6073 = vmatmul.mubr.msk.bf16.vlgmr.msra.gmra.mrb[72].mxu0 %vm520_vm1, %v476_v43 }
  0xec   : > { %6079 = vmatmul.mubr.msk.bf16.vlgmr.msra.gmra.mrb[72].mxu1 %vm520_vm1, %v476_v43  ;;  %6083 = vmatpush3.bf16.xpose.msra.mxu0 %v7227_v41 }
  0xed   : > { %6089 = vmatpush3.bf16.xpose.msra.mxu1 %v7230_v42  ;;  %6084 = vmatprep.mubr.msk.bf16.mxu0 %vm6816_vm0, %v6815_v0 }
  0xee   : > { %6094 = vmatprep.subr.bf16.mxu0 %v6815_v0  ;;  %6090 = vmatprep.mubr.msk.bf16.mxu1 %vm6816_vm0, %v6815_v0 }
  0xef   : > { %6100 = vmatprep.subr.bf16.mxu1 %v6815_v0 }
  0xf3   : > { %6085 = vmatmul.mubr.msk.bf16.vlgmr.msra.gmra.mrb[76].mxu0 %vm520_vm1, %v476_v43 }
  0xf4   : > { %6091 = vmatmul.mubr.msk.bf16.vlgmr.msra.gmra.mrb[76].mxu1 %vm520_vm1, %v476_v43  ;;  %6095 = vmatpush3.bf16.xpose.msra.mxu0 %v7209_v36 }
  0xf5   : > { %6101 = vmatpush3.bf16.xpose.msra.mxu1 %v7212_v37  ;;  %6096 = vmatprep.mubr.msk.bf16.mxu0 %vm6816_vm0, %v6815_v0 }
  0xf6   : > { %6106 = vmatprep.subr.bf16.mxu0 %v6815_v0  ;;  %6102 = vmatprep.mubr.msk.bf16.mxu1 %vm6816_vm0, %v6815_v0 }
  0xf7   : > { %6112 = vmatprep.subr.bf16.mxu1 %v6815_v0 }
  0xfb   : > { %6097 = vmatmul.mubr.msk.bf16.vlgmr.msra.gmra.mrb[80].mxu0 %vm520_vm1, %v477_v45 }
  0xfc   : > { %6103 = vmatmul.mubr.msk.bf16.vlgmr.msra.gmra.mrb[80].mxu1 %vm520_vm1, %v477_v45  ;;  %6107 = vmatpush3.bf16.xpose.msra.mxu0 %v7227_v41 }
  0xfd   : > { %6113 = vmatpush3.bf16.xpose.msra.mxu1 %v7230_v42  ;;  %6108 = vmatprep.mubr.msk.bf16.mxu0 %vm6816_vm0, %v6815_v0 }
  0xfe   : > { %6118 = vmatprep.subr.bf16.mxu0 %v6815_v0  ;;  %6114 = vmatprep.mubr.msk.bf16.mxu1 %vm6816_vm0, %v6815_v0 }
  0xff   : > { %6124 = vmatprep.subr.bf16.mxu1 %v6815_v0 }
 0x103   : > { %6109 = vmatmul.mubr.msk.bf16.vlgmr.msra.gmra.mrb[84].mxu0 %vm520_vm1, %v477_v45 }
 0x104   : > { %6115 = vmatmul.mubr.msk.bf16.vlgmr.msra.gmra.mrb[84].mxu1 %vm520_vm1, %v477_v45  ;;  %6119 = vmatpush3.bf16.xpose.msra.mxu0 %v7209_v36 }
 0x105   : > { %6125 = vmatpush3.bf16.xpose.msra.mxu1 %v7212_v37  ;;  %6120 = vmatprep.mubr.msk.bf16.mxu0 %vm6816_vm0, %v6815_v0 }
 0x106   : > { %6130 = vmatprep.subr.bf16.mxu0 %v6815_v0  ;;  %6126 = vmatprep.mubr.msk.bf16.mxu1 %vm6816_vm0, %v6815_v0 }
 0x107   : > { %6136 = vmatprep.subr.bf16.mxu1 %v6815_v0 }
 0x10b   : > { %6121 = vmatmul.mubr.msk.bf16.vlgmr.msra.gmra.mrb[88].mxu0 %vm520_vm1, %v478_v10 }
 0x10c   : > { %6127 = vmatmul.mubr.msk.bf16.vlgmr.msra.gmra.mrb[88].mxu1 %vm520_vm1, %v478_v10  ;;  %6131 = vmatpush3.bf16.xpose.msra.mxu0 %v7227_v41 }
 0x10d   : > { %6137 = vmatpush3.bf16.xpose.msra.mxu1 %v7230_v42  ;;  %6132 = vmatprep.mubr.msk.bf16.mxu0 %vm6816_vm0, %v6815_v0 }
 0x10e   : > { %6138 = vmatprep.mubr.msk.bf16.mxu1 %vm6816_vm0, %v6815_v0  ;;  %6142 = vmatprep.subr.bf16.mxu0 %v6815_v0 }
 0x10f   : > { %6148 = vmatprep.subr.bf16.mxu1 %v6815_v0 }
 0x113   : > { %6133 = vmatmul.mubr.msk.bf16.vlgmr.msra.gmra.mrb[92].mxu0 %vm520_vm1, %v478_v10 }
 0x114   : > { %6139 = vmatmul.mubr.msk.bf16.vlgmr.msra.gmra.mrb[92].mxu1 %vm520_vm1, %v478_v10  ;;  %6144 = vmatprep.mubr.msk.bf16.mxu0 %vm6816_vm0, %v6815_v0 }
 0x115   : > { %6150 = vmatprep.mubr.msk.bf16.mxu1 %vm6816_vm0, %v6815_v0 }
 0x12d   : > { %v7278_v47 = vpop.f32.mrb[0].mxu0 }
 0x12e   : > { %v2560_v49 = vadd.f32 %v7263_v44, %v7278_v47  ;;  %v7284_v50 = vpop.f32.mrb[0].mxu1  ;;  %v5858_v51 = vpop.f32.mrb[1].mxu0 }
 0x12f   : > { %v2561_v52 = vadd.f32 %v7276_v46, %v7284_v50  ;;  %v5864_v53 = vpop.f32.mrb[1].mxu1  ;;  %v564_v54 = vpop.f32.mrb[2].mxu0 }
 0x130   : > { %v5565_v55 = vmul.f32 -1.442695, %v2560_v49  ;;  %v612_v56 = vpop.f32.mrb[2].mxu1  ;;  %v5859_v57 = vpop.f32.mrb[3].mxu0 }
 0x131   : > { %v5566_v58 = vmul.f32 -1.442695, %v2561_v52  ;;  %v5865_v59 = vpop.f32.mrb[3].mxu1 }
 0x132   : > { %6543 = vpow2.f32 %v5565_v55 }
 0x133   : > { %6545 = vpow2.f32 %v5566_v58 }
 0x135   : > { %v7300_v61 = vpop.f32.mrb[4].mxu0 }
 0x136   : > { %v2562_v62 = vadd.f32 %v7280_v48, %v7300_v61  ;;  %v7304_v63 = vpop.f32.mrb[4].mxu1  ;;  %v5870_v1 = vpop.f32.mrb[5].mxu0 }
 0x137   : > { %v2563_v2 = vadd.f32 %v7298_v60, %v7304_v63  ;;  %v5876_v3 = vpop.f32.mrb[5].mxu1  ;;  %v660_v4 = vpop.f32.mrb[6].mxu0 }
 0x138   : > { %v5567_v5 = vmul.f32 -1.442695, %v2562_v62  ;;  %v708_v6 = vpop.f32.mrb[6].mxu1  ;;  %v5871_v7 = vpop.f32.mrb[7].mxu0 }
 0x139   : > { %v5568_v8 = vmul.f32 -1.442695, %v2563_v2  ;;  %v5877_v9 = vpop.f32.mrb[7].mxu1 }
 0x13a   : > { %6547 = vpow2.f32 %v5567_v5 }
 0x13b   : > { %6549 = vpow2.f32 %v5568_v8 }
 0x13c   : > { %v6544_v11 = vpop.eup %6543 }
 0x13d   : > { %v6546_v12 = vpop.eup %6545  ;;  %v2624_v13 = vadd.f32 1.0, %v6544_v11  ;;  %v7319_v14 = vpop.f32.mrb[8].mxu0 }
 0x13e   : > { %v2625_v15 = vadd.f32 1.0, %v6546_v12  ;;  %v2564_v16 = vadd.f32 %v7263_v44, %v7319_v14  ;;  %v7323_v17 = vpop.f32.mrb[8].mxu1  ;;  %v5882_v18 = vpop.f32.mrb[9].mxu0 }
 0x13f   : > { %6551 = vrcp.f32 %v2624_v13  ;;  %v2565_v19 = vadd.f32 %v7276_v46, %v7323_v17  ;;  %v5888_v20 = vpop.f32.mrb[9].mxu1  ;;  %v751_v21 = vpop.f32.mrb[10].mxu0 }
 0x140   : > { %6553 = vrcp.f32 %v2625_v15  ;;  %v5569_v22 = vmul.f32 -1.442695, %v2564_v16  ;;  %v791_v23 = vpop.f32.mrb[10].mxu1  ;;  %v5883_v24 = vpop.f32.mrb[11].mxu0 }
 0x141   : > { %v5570_v25 = vmul.f32 -1.442695, %v2565_v19  ;;  %v5889_v26 = vpop.f32.mrb[11].mxu1 }
 0x142   : > { %6555 = vpow2.f32 %v5569_v22 }
 0x143   : > { %6557 = vpow2.f32 %v5570_v25 }
 0x144   : > { %v6548_v27 = vpop.eup %6547 }
 0x145   : > { %v6550_v28 = vpop.eup %6549  ;;  %v2626_v29 = vadd.f32 1.0, %v6548_v27  ;;  %v7337_v30 = vpop.f32.mrb[12].mxu0 }
 0x146   : > { %v2627_v31 = vadd.f32 1.0, %v6550_v28  ;;  %v2566_v32 = vadd.f32 %v7280_v48, %v7337_v30  ;;  %v7341_v33 = vpop.f32.mrb[12].mxu1  ;;  %v5894_v34 = vpop.f32.mrb[13].mxu0 }
 0x147   : > { %6559 = vrcp.f32 %v2626_v29  ;;  %v2567_v35 = vadd.f32 %v7298_v60, %v7341_v33  ;;  %v5900_v36 = vpop.f32.mrb[13].mxu1  ;;  %v831_v37 = vpop.f32.mrb[14].mxu0 }
 0x148   : > { %6561 = vrcp.f32 %v2627_v31  ;;  %v5571_v38 = vmul.f32 -1.442695, %v2566_v32  ;;  %v871_v39 = vpop.f32.mrb[14].mxu1  ;;  %v5895_v40 = vpop.f32.mrb[15].mxu0 }
 0x149   : > { %v6552_v41 = vpop.eup %6551  ;;  %v5572_v42 = vmul.f32 -1.442695, %v2567_v35  ;;  %v5901_v43 = vpop.f32.mrb[15].mxu1 }
 0x14a   : > { %v6554_v45 = vpop.eup %6553  ;;  %6563 = vpow2.f32 %v5571_v38  ;;  %v2672_v49 = vmul.f32 0.35355338, %v6552_v41 }
 0x14b   : > { %6565 = vpow2.f32 %v5572_v42  ;;  %v2673_v51 = vmul.f32 0.35355338, %v6554_v45 }
 0x14c   : > { %v6556_v52 = vpop.eup %6555  ;;  %2690 = vperm.xlu0 %6529, %v2672_v49  }
 0x14d   : > { %v6558_v53 = vpop.eup %6557  ;;  %v2628_v54 = vadd.f32 1.0, %v6556_v52  ;;  %2695 = vperm.xlu1 %6530, %v2673_v51   ;;  %v7351_v55 = vpop.f32.mrb[16].mxu0 }
 0x14e   : > { %v2629_v56 = vadd.f32 1.0, %v6558_v53  ;;  %v2568_v57 = vadd.f32 %v7263_v44, %v7351_v55  ;;  %v7355_v58 = vpop.f32.mrb[16].mxu1  ;;  %v5906_v59 = vpop.f32.mrb[17].mxu0 }
 0x14f   : > { %6567 = vrcp.f32 %v2628_v54  ;;  %v2569_v62 = vadd.f32 %v7276_v46, %v7355_v58  ;;  %v5912_v1 = vpop.f32.mrb[17].mxu1  ;;  %v914_v2 = vpop.f32.mrb[18].mxu0 }
 0x150   : > { %6569 = vrcp.f32 %v2629_v56  ;;  %v5573_v3 = vmul.f32 -1.442695, %v2568_v57  ;;  %v954_v4 = vpop.f32.mrb[18].mxu1  ;;  %v5907_v5 = vpop.f32.mrb[19].mxu0 }
 0x151   : > { %v6560_v6 = vpop.eup %6559  ;;  %v5574_v7 = vmul.f32 -1.442695, %v2569_v62  ;;  %v5913_v8 = vpop.f32.mrb[19].mxu1 }
 0x152   : > { %v6562_v9 = vpop.eup %6561  ;;  %6571 = vpow2.f32 %v5573_v3  ;;  %v2674_v10 = vmul.f32 0.35355338, %v6560_v6 }
 0x153   : > { %6573 = vpow2.f32 %v5574_v7  ;;  %v2675_v11 = vmul.f32 0.35355338, %v6562_v9 }
 0x154   : > { %v6564_v12 = vpop.eup %6563  ;;  %2700 = vperm.xlu1 %6530, %v2674_v10  }
 0x155   : > { %v6566_v13 = vpop.eup %6565  ;;  %v2630_v15 = vadd.f32 1.0, %v6564_v12  ;;  %2705 = vperm.xlu0 %6529, %v2675_v11   ;;  %v7359_v16 = vpop.f32.mrb[20].mxu0 }
 0x156   : > { %v2631_v18 = vadd.f32 1.0, %v6566_v13  ;;  %v2570_v19 = vadd.f32 %v7280_v48, %v7359_v16  ;;  %v7363_v20 = vpop.f32.mrb[20].mxu1  ;;  %v5918_v21 = vpop.f32.mrb[21].mxu0 }
 0x157   : > { %6575 = vrcp.f32 %v2630_v15  ;;  %v2571_v22 = vadd.f32 %v7298_v60, %v7363_v20  ;;  %v5924_v23 = vpop.f32.mrb[21].mxu1  ;;  %v994_v24 = vpop.f32.mrb[22].mxu0 }
 0x158   : > { %6577 = vrcp.f32 %v2631_v18  ;;  %v5575_v25 = vmul.f32 -1.442695, %v2570_v19  ;;  %v1034_v26 = vpop.f32.mrb[22].mxu1  ;;  %v5919_v27 = vpop.f32.mrb[23].mxu0 }
 0x159   : > { %v6568_v28 = vpop.eup %6567  ;;  %v5576_v29 = vmul.f32 -1.442695, %v2571_v22  ;;  %v5925_v31 = vpop.f32.mrb[23].mxu1 }
 0x15a   : > { %v6570_v32 = vpop.eup %6569  ;;  %6579 = vpow2.f32 %v5575_v25  ;;  %v2676_v34 = vmul.f32 0.35355338, %v6568_v28 }
 0x15b   : > { %6581 = vpow2.f32 %v5576_v29  ;;  %v2677_v35 = vmul.f32 0.35355338, %v6570_v32 }
 0x15c   : > { %v6572_v36 = vpop.eup %6571  ;;  %2710 = vperm.xlu1 %6530, %v2676_v34  }
 0x15d   : > { %v6574_v37 = vpop.eup %6573  ;;  %v2632_v38 = vadd.f32 1.0, %v6572_v36  ;;  %2715 = vperm.xlu0 %6529, %v2677_v35   ;;  %v7367_v39 = vpop.f32.mrb[24].mxu0 }
 0x15e   : > { %v2633_v40 = vadd.f32 1.0, %v6574_v37  ;;  %v2572_v41 = vadd.f32 %v7263_v44, %v7367_v39  ;;  %v7371_v42 = vpop.f32.mrb[24].mxu1  ;;  %v5930_v43 = vpop.f32.mrb[25].mxu0 }
 0x15f   : > { %6583 = vrcp.f32 %v2632_v38  ;;  %v2573_v45 = vadd.f32 %v7276_v46, %v7371_v42  ;;  %v5936_v49 = vpop.f32.mrb[25].mxu1  ;;  %v1077_v51 = vpop.f32.mrb[26].mxu0 }
 0x160   : > { %6585 = vrcp.f32 %v2633_v40  ;;  %v5577_v52 = vmul.f32 -1.442695, %v2572_v41  ;;  %v1117_v53 = vpop.f32.mrb[26].mxu1  ;;  %v5931_v54 = vpop.f32.mrb[27].mxu0 }
 0x161   : > { %v6576_v56 = vpop.eup %6575  ;;  %v5578_v57 = vmul.f32 -1.442695, %v2573_v45  ;;  %v5937_v59 = vpop.f32.mrb[27].mxu1 }
 0x162   : > { %v6578_v62 = vpop.eup %6577  ;;  %6587 = vpow2.f32 %v5577_v52  ;;  %v2678_v1 = vmul.f32 0.35355338, %v6576_v56 }
 0x163   : > { %6589 = vpow2.f32 %v5578_v57  ;;  %v2679_v44 = vmul.f32 0.35355338, %v6578_v62 }
 0x164   : > { %v6580_v2 = vpop.eup %6579  ;;  %2720 = vperm.xlu1 %6530, %v2678_v1  }
 0x165   : > { %v6582_v3 = vpop.eup %6581  ;;  %v2634_v4 = vadd.f32 1.0, %v6580_v2  ;;  %2725 = vperm.xlu0 %6529, %v2679_v44   ;;  %v7375_v46 = vpop.f32.mrb[28].mxu0 }
 0x166   : > { %v2635_v5 = vadd.f32 1.0, %v6582_v3  ;;  %v2574_v6 = vadd.f32 %v7280_v48, %v7375_v46  ;;  %v7379_v7 = vpop.f32.mrb[28].mxu1  ;;  %v5942_v8 = vpop.f32.mrb[29].mxu0 }
 0x167   : > { %6591 = vrcp.f32 %v2634_v4  ;;  %v2575_v9 = vadd.f32 %v7298_v60, %v7379_v7  ;;  %v1157_v10 = vpop.f32.mrb[30].mxu0  ;;  %v5948_v11 = vpop.f32.mrb[29].mxu1 }
 0x168   : > { %6593 = vrcp.f32 %v2635_v5  ;;  %v5579_v12 = vmul.f32 -1.442695, %v2574_v6  ;;  %v5943_v13 = vpop.f32.mrb[31].mxu0  ;;  %v1197_v15 = vpop.f32.mrb[30].mxu1 }
 0x169   : > { %v6584_v18 = vpop.eup %6583  ;;  %v5580_v19 = vmul.f32 -1.442695, %v2575_v9  ;;  %v5949_v21 = vpop.f32.mrb[31].mxu1 }
 0x16a   : > { %v6586_v22 = vpop.eup %6585  ;;  %6595 = vpow2.f32 %v5579_v12  ;;  %v2680_v23 = vmul.f32 0.35355338, %v6584_v18 }
 0x16b   : > { %6597 = vpow2.f32 %v5580_v19  ;;  %v2681_v48 = vmul.f32 0.35355338, %v6586_v22 }
 0x16c   : > { %v6588_v24 = vpop.eup %6587  ;;  %2730 = vperm.xlu1 %6530, %v2680_v23  }
 0x16d   : > { %v6590_v25 = vpop.eup %6589  ;;  %v2636_v26 = vadd.f32 1.0, %v6588_v24  ;;  %2735 = vperm.xlu0 %6529, %v2681_v48   ;;  %v1240_v60 = vpop.f32.mrb[32].mxu0 }
 0x16e   : > { %v2637_v27 = vadd.f32 1.0, %v6590_v25  ;;  %v2800_v28 = vpack.c.bf16 %v1240_v60, %v1240_v60  ;;  %v5954_v29 = vpop.f32.mrb[33].mxu0  ;;  %v1283_v31 = vpop.f32.mrb[32].mxu1 }
 0x16f   : > { %6599 = vrcp.f32 %v2636_v26  ;;  %v1243_v32 = vpop.f32.mrb[34].mxu0  ;;  %v2801_v34 = vpack.c.bf16 %v1283_v31, %v1283_v31  ;;  %v5960_v35 = vpop.f32.mrb[33].mxu1 }
 0x170   : > { %6601 = vrcp.f32 %v2637_v27  ;;  %v2821_v36 = vsel %vm2816_vm2, %v2800_v28, 0  ;;  %v5955_v37 = vpop.f32.mrb[35].mxu0  ;;  %v1286_v38 = vpop.f32.mrb[34].mxu1 }
 0x171   : > { %v6592_v40 = vpop.eup %6591  ;;  %v2867_v41 = vsel %vm2816_vm2, %v2801_v34, 0  ;;  %v5961_v43 = vpop.f32.mrb[35].mxu1  ;;  %6143 = vmatpush3.bf16.xpose.msra.mxu0 %v2821_v36 }
 0x172   : > { %v6594_v45 = vpop.eup %6593  ;;  %v2682_v49 = vmul.f32 0.35355338, %v6592_v40  ;;  %6149 = vmatpush3.bf16.xpose.msra.mxu1 %v2867_v41  ;;  %6154 = vmatprep.subr.bf16.mxu0 %v6815_v0 }
 0x173   : > { %v2683_v51 = vmul.f32 0.35355338, %v6594_v45  ;;  %6160 = vmatprep.subr.bf16.mxu1 %v6815_v0 }
 0x174   : > { %v6596_v52 = vpop.eup %6595  ;;  %2740 = vperm.xlu1 %6530, %v2682_v49  }
 0x175   : > { %v6598_v53 = vpop.eup %6597  ;;  %v2638_v54 = vadd.f32 1.0, %v6596_v52  ;;  %2745 = vperm.xlu0 %6529, %v2683_v51   ;;  %v7387_v56 = vpop.f32.mrb[36].mxu0 }
 0x176   : > { %v2639_v57 = vadd.f32 1.0, %v6598_v53  ;;  %v7389_v59 = vpop.f32.mrb[36].mxu1  ;;  %v5966_v62 = vpop.f32.mrb[37].mxu0 }
 0x177   : > { %6603 = vrcp.f32 %v2638_v54  ;;  %v1329_v1 = vpop.f32.mrb[38].mxu0  ;;  %v5972_v44 = vpop.f32.mrb[37].mxu1 }
 0x178   : > { %6605 = vrcp.f32 %v2639_v57  ;;  %v1372_v2 = vpop.f32.mrb[38].mxu1  ;;  %v5967_v3 = vpop.f32.mrb[39].mxu0 }
 0x179   : > { %v6600_v4 = vpop.eup %6599  ;;  %v5973_v5 = vpop.f32.mrb[39].mxu1 }
 0x17a   : > { %v6602_v6 = vpop.eup %6601  ;;  %v2684_v8 = vmul.f32 0.35355338, %v6600_v4 }
 0x17b   : > { %v2685_v9 = vmul.f32 0.35355338, %v6602_v6 }
 0x17c   : > { %2750 = vperm.xlu1 %6530, %v2684_v8  }
 0x17d   : > { %2755 = vperm.xlu0 %6529, %v2685_v9   ;;  %v7391_v10 = vpop.f32.mrb[40].mxu0 }
 0x17e   : > { %v7393_v11 = vpop.f32.mrb[40].mxu1  ;;  %v5978_v12 = vpop.f32.mrb[41].mxu0 }
 0x17f   : > { %v5984_v13 = vpop.f32.mrb[41].mxu1  ;;  %v1415_v15 = vpop.f32.mrb[42].mxu0 }
 0x180   : > { %v1455_v18 = vpop.f32.mrb[42].mxu1  ;;  %v5979_v19 = vpop.f32.mrb[43].mxu0 }
 0x181   : > { %v6604_v21 = vpop.eup %6603  ;;  %v5985_v22 = vpop.f32.mrb[43].mxu1 }
 0x182   : > { %v6606_v23 = vpop.eup %6605  ;;  %v2686_v48 = vmul.f32 0.35355338, %v6604_v21 }
 0x183   : > { %v2687_v24 = vmul.f32 0.35355338, %v6606_v23  ;;  %v2802_v23 = vpack.c.bf16 %v7387_v56, %v7387_v56  ;;  %v2804_v56 = vpack.c.bf16 %v7391_v10, %v7391_v10 }
 0x184   : > { %2760 = vperm.xlu1 %6530, %v2686_v48  }
 0x185   : > { %2765 = vperm.xlu0 %6529, %v2687_v24   ;;  %v7395_v25 = vpop.f32.mrb[44].mxu0  ;;  %v2803_v24 = vpack.c.bf16 %v7389_v59, %v7389_v59 }
 0x186   : > { %v7397_v26 = vpop.f32.mrb[44].mxu1  ;;  %v5990_v60 = vpop.f32.mrb[45].mxu0 }
 0x187   : > { %v5996_v27 = vpop.f32.mrb[45].mxu1  ;;  %v1495_v28 = vpop.f32.mrb[46].mxu0 }
 0x188   : > { %v1535_v29 = vpop.f32.mrb[46].mxu1  ;;  %v5991_v31 = vpop.f32.mrb[47].mxu0 }
 0x189   : > { %v5997_v32 = vpop.f32.mrb[47].mxu1  ;;  %v2913_v31 = vsel %vm2816_vm2, %v2802_v23, 0 }
 0x18d   : > { %v7399_v34 = vpop.f32.mrb[48].mxu0 }
 0x18e   : > { %v7401_v35 = vpop.f32.mrb[48].mxu1  ;;  %v6002_v36 = vpop.f32.mrb[49].mxu0 }
 0x18f   : > { %v6008_v37 = vpop.f32.mrb[49].mxu1  ;;  %v1578_v38 = vpop.f32.mrb[50].mxu0  ;;  %v2959_v36 = vsel %vm2816_vm2, %v2803_v24, 0 }
 0x190   : > { %v1618_v40 = vpop.f32.mrb[50].mxu1  ;;  %v6003_v41 = vpop.f32.mrb[51].mxu0 }
 0x191   : > { %v6009_v43 = vpop.f32.mrb[51].mxu1  ;;  %v3005_v40 = vsel %vm2816_vm2, %v2804_v56, 0 }
 0x195   : > { %v7403_v45 = vpop.f32.mrb[52].mxu0 }
 0x196   : > { %v7405_v49 = vpop.f32.mrb[52].mxu1  ;;  %v6014_v51 = vpop.f32.mrb[53].mxu0  ;;  %v2810_v24 = vpack.c.bf16 %v7403_v45, %v7403_v45 }
 0x197   : > { %v6020_v52 = vpop.f32.mrb[53].mxu1  ;;  %v1658_v53 = vpop.f32.mrb[54].mxu0 }
 0x198   : > { %v1698_v54 = vpop.f32.mrb[54].mxu1  ;;  %v6015_v57 = vpop.f32.mrb[55].mxu0 }
 0x199   : > { %v6021_v62 = vpop.f32.mrb[55].mxu1 }
 0x19d   : > { %v7407_v1 = vpop.f32.mrb[56].mxu0 }
 0x19e   : > { %v7409_v44 = vpop.f32.mrb[56].mxu1  ;;  %v6026_v2 = vpop.f32.mrb[57].mxu0 }
 0x19f   : > { %v6032_v3 = vpop.f32.mrb[57].mxu1  ;;  %v1741_v4 = vpop.f32.mrb[58].mxu0 }
 0x1a0   : > { %v1781_v5 = vpop.f32.mrb[58].mxu1  ;;  %v6027_v6 = vpop.f32.mrb[59].mxu0 }
 0x1a1   : > { %v6033_v8 = vpop.f32.mrb[59].mxu1  ;;  %v2809_v5 = vpack.c.bf16 %v7401_v35, %v7401_v35 }
 0x1a3   : > { %v3235_v23 = vsel %vm2816_vm2, %v2809_v5, 0 }
 0x1a5   : > { %v7411_v9 = vpop.f32.mrb[60].mxu0 }
 0x1a6   : > { %v7413_v12 = vpop.f32.mrb[60].mxu1  ;;  %v6038_v13 = vpop.f32.mrb[61].mxu0 }
 0x1a7   : > { %v1821_v15 = vpop.f32.mrb[62].mxu0  ;;  %v6044_v18 = vpop.f32.mrb[61].mxu1 }
 0x1a8   : > { %v6039_v19 = vpop.f32.mrb[63].mxu0  ;;  %v1861_v21 = vpop.f32.mrb[62].mxu1 }
 0x1a9   : > { %v6045_v22 = vpop.f32.mrb[63].mxu1 }
 0x1af   : > { %v7459_v2 = vpop.f32.mrb[64].mxu1 }
 0x1b0   : > { %v6056_v3 = vpop.f32.mrb[65].mxu1 }
 0x1b1   : > { %v1950_v18 = vpop.f32.mrb[66].mxu1 }
 0x1b2   : > { %v6057_v22 = vpop.f32.mrb[67].mxu1 }
 0x1b3   : > { %v2815_v22 = vpack.c.bf16 %v7413_v12, %v7413_v12 }
 0x1cb   : > { %v2691_v48 = vpop.permute.xlu0 %2690 }
 0x1cc   : > { %v2696_v60 = vpop.permute.xlu1 %2695  ;;  %v2768_v27 = vmul.f32 %v2691_v48, %v7278_v47 }
 0x1cd   : > { %v2769_v28 = vmul.f32 %v2696_v60, %v7284_v50  ;;  %v2805_v50 = vpack.c.bf16 %v7393_v11, %v7393_v11  ;;  %v2806_v11 = vpack.c.bf16 %v7395_v25, %v7395_v25 }
 0x1ce   : > { %v2784_v29 = vpack.c.bf16 %v2768_v27, %v2768_v27 }
 0x1cf   : > { %v2785_v32 = vpack.c.bf16 %v2769_v28, %v2769_v28  ;;  %v3051_v43 = vsel %vm2816_vm2, %v2805_v50, 0  ;;  %v3097_v54 = vsel %vm2816_vm2, %v2806_v11, 0  ;;  %v2812_v11 = vpack.c.bf16 %v7407_v1, %v7407_v1 }
 0x1d0   : > { %6145 = vmatmul.mubr.msk.bf16.vlgmr.msra.gmra.mrb[96].mxu0 %vm2816_vm2, %v2784_v29 }
 0x1d1   : > { %6151 = vmatmul.mubr.msk.bf16.vlgmr.msra.gmra.mrb[96].mxu1 %vm2816_vm2, %v2785_v32  ;;  %6155 = vmatpush3.bf16.xpose.msra.mxu0 %v2913_v31  ;;  %v2811_v31 = vpack.c.bf16 %v7405_v49, %v7405_v49 }
 0x1d2   : > { %6161 = vmatpush3.bf16.xpose.msra.mxu1 %v2959_v36  ;;  %6156 = vmatprep.mubr.msk.bf16.mxu0 %vm6816_vm0, %v6815_v0 }
 0x1d3   : > { %v2701_v47 = vpop.permute.xlu1 %2700  ;;  %6162 = vmatprep.mubr.msk.bf16.mxu1 %vm6816_vm0, %v6815_v0  ;;  %6166 = vmatprep.subr.bf16.mxu0 %v6815_v0 }
 0x1d4   : > { %v2706_v59 = vpop.permute.xlu0 %2705  ;;  %v2770_v37 = vmul.f32 %v2701_v47, %v7300_v61  ;;  %6172 = vmatprep.subr.bf16.mxu1 %v6815_v0 }
 0x1d5   : > { %v2771_v38 = vmul.f32 %v2706_v59, %v7304_v63  ;;  %v2807_v63 = vpack.c.bf16 %v7397_v26, %v7397_v26  ;;  %v7457_v26 = vpop.f32.mrb[64].mxu0 }
 0x1d6   : > { %v2786_v10 = vpack.c.bf16 %v2770_v37, %v2770_v37 }
 0x1d7   : > { %v2787_v41 = vpack.c.bf16 %v2771_v38, %v2771_v38  ;;  %v3143_v62 = vsel %vm2816_vm2, %v2807_v63, 0  ;;  %v3281_v38 = vsel %vm2816_vm2, %v2810_v24, 0 }
 0x1d8   : > { %6157 = vmatmul.mubr.msk.bf16.vlgmr.msra.gmra.mrb[100].mxu0 %vm2816_vm2, %v2786_v10 }
 0x1d9   : > { %6163 = vmatmul.mubr.msk.bf16.vlgmr.msra.gmra.mrb[100].mxu1 %vm2816_vm2, %v2787_v41  ;;  %6167 = vmatpush3.bf16.xpose.msra.mxu0 %v3005_v40  ;;  %v3327_v41 = vsel %vm2816_vm2, %v2811_v31, 0  ;;  %v3511_v31 = vsel %vm2816_vm2, %v2815_v22, 0 }
 0x1da   : > { %6173 = vmatpush3.bf16.xpose.msra.mxu1 %v3051_v43  ;;  %6168 = vmatprep.mubr.msk.bf16.mxu0 %vm6816_vm0, %v6815_v0 }
 0x1db   : > { %v2711_v61 = vpop.permute.xlu1 %2710  ;;  %6174 = vmatprep.mubr.msk.bf16.mxu1 %vm6816_vm0, %v6815_v0  ;;  %6178 = vmatprep.subr.bf16.mxu0 %v6815_v0 }
 0x1dc   : > { %v2716_v51 = vpop.permute.xlu0 %2715  ;;  %v2772_v52 = vmul.f32 %v2711_v61, %v7319_v14  ;;  %6184 = vmatprep.subr.bf16.mxu1 %v6815_v0  ;;  %v2808_v14 = vpack.c.bf16 %v7399_v34, %v7399_v34 }
 0x1dd   : > { %v2773_v53 = vmul.f32 %v2716_v51, %v7323_v17  ;;  %v6050_v17 = vpop.f32.mrb[65].mxu0 }
 0x1de   : > { %v2788_v25 = vpack.c.bf16 %v2772_v52, %v2772_v52  ;;  %v1907_v6 = vpop.f32.mrb[66].mxu0  ;;  %v3189_v21 = vsel %vm2816_vm2, %v2808_v14, 0 }
 0x1df   : > { %v2789_v57 = vpack.c.bf16 %v2773_v53, %v2773_v53  ;;  %v6051_v34 = vpop.f32.mrb[67].mxu0  ;;  %v2813_v53 = vpack.c.bf16 %v7409_v44, %v7409_v44 }
 0x1e0   : > { %6169 = vmatmul.mubr.msk.bf16.vlgmr.msra.gmra.mrb[104].mxu0 %vm2816_vm2, %v2788_v25  ;;  %v1990_v48 = vpop.f32.mrb[68].mxu0  ;;  %v2814_v34 = vpack.c.bf16 %v7411_v9, %v7411_v9 }
 0x1e1   : > { %6175 = vmatmul.mubr.msk.bf16.vlgmr.msra.gmra.mrb[104].mxu1 %vm2816_vm2, %v2789_v57  ;;  %6179 = vmatpush3.bf16.xpose.msra.mxu0 %v3097_v54  ;;  %v6062_v60 = vpop.f32.mrb[69].mxu0 }
 0x1e2   : > { %6185 = vmatpush3.bf16.xpose.msra.mxu1 %v3143_v62  ;;  %6180 = vmatprep.mubr.msk.bf16.mxu0 %vm6816_vm0, %v6815_v0  ;;  %v1993_v32 = vpop.f32.mrb[70].mxu0 }
 0x1e3   : > { %v2721_v4 = vpop.permute.xlu1 %2720  ;;  %6186 = vmatprep.mubr.msk.bf16.mxu1 %vm6816_vm0, %v6815_v0  ;;  %6190 = vmatprep.subr.bf16.mxu0 %v6815_v0  ;;  %v6063_v50 = vpop.f32.mrb[71].mxu0 }
 0x1e4   : > { %v2726_v8 = vpop.permute.xlu0 %2725  ;;  %v2774_v13 = vmul.f32 %v2721_v4, %v7337_v30  ;;  %6196 = vmatprep.subr.bf16.mxu1 %v6815_v0  ;;  %v2033_v30 = vpop.f32.mrb[68].mxu1  ;;  %v3373_v4 = vsel %vm2816_vm2, %v2812_v11, 0 }
 0x1e5   : > { %v2775_v15 = vmul.f32 %v2726_v8, %v7341_v33  ;;  %v3747_v33 = vpack.c.bf16 %v1990_v48, %v1990_v48  ;;  %v3748_v27 = vpack.c.bf16 %v2033_v30, %v2033_v30  ;;  %v6068_v28 = vpop.f32.mrb[69].mxu1  ;;  %v3419_v8 = vsel %vm2816_vm2, %v2813_v53, 0 }
 0x1e6   : > { %v2790_v19 = vpack.c.bf16 %v2774_v13, %v2774_v13  ;;  %v2036_v59 = vpop.f32.mrb[70].mxu1 }
 0x1e7   : > { %v2791_v35 = vpack.c.bf16 %v2775_v15, %v2775_v15  ;;  %v7489_v56 = vsel %vm3764_vm3, %v3747_v33, 0  ;;  %v7492_v47 = vsel %vm3764_vm3, %v3748_v27, 0  ;;  %v6069_v10 = vpop.f32.mrb[71].mxu1  ;;  %v3465_v27 = vsel %vm2816_vm2, %v2814_v34, 0 }
 0x1e8   : > { %6181 = vmatmul.mubr.msk.bf16.vlgmr.msra.gmra.mrb[108].mxu0 %vm2816_vm2, %v2790_v19  ;;  %v2116_v43 = vpop.f32.mrb[72].mxu1 }
 0x1e9   : > { %6187 = vmatmul.mubr.msk.bf16.vlgmr.msra.gmra.mrb[108].mxu1 %vm2816_vm2, %v2791_v35  ;;  %6191 = vmatpush3.bf16.xpose.msra.mxu0 %v3189_v21  ;;  %v3750_v63 = vpack.c.bf16 %v2116_v43, %v2116_v43  ;;  %v6080_v51 = vpop.f32.mrb[73].mxu1 }
 0x1ea   : > { %6197 = vmatpush3.bf16.xpose.msra.mxu1 %v3235_v23  ;;  %6192 = vmatprep.mubr.msk.bf16.mxu0 %vm6816_vm0, %v6815_v0  ;;  %v2119_v17 = vpop.f32.mrb[74].mxu1 }
 0x1eb   : > { %v2731_v29 = vpop.permute.xlu1 %2730  ;;  %6198 = vmatprep.mubr.msk.bf16.mxu1 %vm6816_vm0, %v6815_v0  ;;  %6202 = vmatprep.subr.bf16.mxu0 %v6815_v0  ;;  %v7514_v62 = vsel %vm3764_vm3, %v3750_v63, 0  ;;  %v6081_v5 = vpop.f32.mrb[75].mxu1 }
 0x1ec   : > { %v2736_v36 = vpop.permute.xlu0 %2735  ;;  %v2776_v45 = vmul.f32 %v2731_v29, %v7351_v55  ;;  %6208 = vmatprep.subr.bf16.mxu1 %v6815_v0  ;;  %v2076_v55 = vpop.f32.mrb[72].mxu0 }
 0x1ed   : > { %v2777_v49 = vmul.f32 %v2736_v36, %v7355_v58  ;;  %v3749_v58 = vpack.c.bf16 %v2076_v55, %v2076_v55  ;;  %v6074_v61 = vpop.f32.mrb[73].mxu0  ;;  %v2196_v13 = vpop.f32.mrb[76].mxu1 }
 0x1ee   : > { %v2792_v37 = vpack.c.bf16 %v2776_v45, %v2776_v45  ;;  %v2079_v25 = vpop.f32.mrb[74].mxu0  ;;  %v3752_v18 = vpack.c.bf16 %v2196_v13, %v2196_v13  ;;  %v6092_v19 = vpop.f32.mrb[77].mxu1 }
 0x1ef   : > { %v2793_v40 = vpack.c.bf16 %v2777_v49, %v2777_v49  ;;  %v7511_v57 = vsel %vm3764_vm3, %v3749_v58, 0  ;;  %v6075_v14 = vpop.f32.mrb[75].mxu0  ;;  %v2199_v33 = vpop.f32.mrb[78].mxu1 }
 0x1f0   : > { %6193 = vmatmul.mubr.msk.bf16.vlgmr.msra.gmra.mrb[112].mxu0 %vm2816_vm2, %v2792_v37  ;;  %v7536_v30 = vsel %vm3764_vm3, %v3752_v18, 0  ;;  %v6093_v28 = vpop.f32.mrb[79].mxu1  ;;  %v3746_v37 = vpack.c.bf16 %v7459_v2, %v7459_v2 }
 0x1f1   : > { %6199 = vmatmul.mubr.msk.bf16.vlgmr.msra.gmra.mrb[112].mxu1 %vm2816_vm2, %v2793_v40  ;;  %6203 = vmatpush3.bf16.xpose.msra.mxu0 %v3281_v38  ;;  %v2279_v32 = vpop.f32.mrb[80].mxu1 }
 0x1f2   : > { %6209 = vmatpush3.bf16.xpose.msra.mxu1 %v3327_v41  ;;  %6204 = vmatprep.mubr.msk.bf16.mxu0 %vm6816_vm0, %v6815_v0  ;;  %v3754_v50 = vpack.c.bf16 %v2279_v32, %v2279_v32  ;;  %v6104_v49 = vpop.f32.mrb[81].mxu1  ;;  %v3812_v51 = vsel %vm3764_vm3, %v3746_v37, 0 }
 0x1f3   : > { %v2741_v52 = vpop.permute.xlu1 %2740  ;;  %6210 = vmatprep.mubr.msk.bf16.mxu1 %vm6816_vm0, %v6815_v0  ;;  %6214 = vmatprep.subr.bf16.mxu0 %v6815_v0  ;;  %v2282_v11 = vpop.f32.mrb[82].mxu1 }
 0x1f4   : > { %v2746_v54 = vpop.permute.xlu0 %2745  ;;  %v2778_v1 = vmul.f32 %v2741_v52, %v7359_v16  ;;  %6220 = vmatprep.subr.bf16.mxu1 %v6815_v0  ;;  %v2156_v16 = vpop.f32.mrb[76].mxu0  ;;  %v7558_v41 = vsel %vm3764_vm3, %v3754_v50, 0 }
 0x1f5   : > { %v2779_v44 = vmul.f32 %v2746_v54, %v7363_v20  ;;  %v3751_v20 = vpack.c.bf16 %v2156_v16, %v2156_v16  ;;  %v6086_v15 = vpop.f32.mrb[77].mxu0  ;;  %v6105_v61 = vpop.f32.mrb[83].mxu1 }
 0x1f6   : > { %v2794_v3 = vpack.c.bf16 %v2778_v1, %v2778_v1  ;;  %v2159_v35 = vpop.f32.mrb[78].mxu0  ;;  %v2359_v52 = vpop.f32.mrb[84].mxu1 }
 0x1f7   : > { %v2795_v6 = vpack.c.bf16 %v2779_v44, %v2779_v44  ;;  %v7533_v48 = vsel %vm3764_vm3, %v3751_v20, 0  ;;  %v6087_v24 = vpop.f32.mrb[79].mxu0  ;;  %v3756_v54 = vpack.c.bf16 %v2359_v52, %v2359_v52 }
 0x1f8   : > { %6205 = vmatmul.mubr.msk.bf16.vlgmr.msra.gmra.mrb[116].mxu0 %vm2816_vm2, %v2794_v3 }
 0x1f9   : > { %6211 = vmatmul.mubr.msk.bf16.vlgmr.msra.gmra.mrb[116].mxu1 %vm2816_vm2, %v2795_v6  ;;  %6215 = vmatpush3.bf16.xpose.msra.mxu0 %v3373_v4  ;;  %v7574_v17 = vsel %vm3764_vm3, %v3756_v54, 0 }
 0x1fa   : > { %6221 = vmatpush3.bf16.xpose.msra.mxu1 %v3419_v8  ;;  %6216 = vmatprep.mubr.msk.bf16.mxu0 %vm6816_vm0, %v6815_v0 }
 0x1fb   : > { %v2751_v21 = vpop.permute.xlu1 %2750  ;;  %6222 = vmatprep.mubr.msk.bf16.mxu1 %vm6816_vm0, %v6815_v0  ;;  %6226 = vmatprep.subr.bf16.mxu0 %v6815_v0 }
 0x1fc   : > { %v2756_v23 = vpop.permute.xlu0 %2755  ;;  %v2780_v9 = vmul.f32 %v2751_v21, %v7367_v39  ;;  %6232 = vmatprep.subr.bf16.mxu1 %v6815_v0  ;;  %v2239_v39 = vpop.f32.mrb[80].mxu0 }
 0x1fd   : > { %v2781_v12 = vmul.f32 %v2756_v23, %v7371_v42  ;;  %v3745_v42 = vpack.c.bf16 %v7457_v26, %v7457_v26  ;;  %v3753_v36 = vpack.c.bf16 %v2239_v39, %v2239_v39  ;;  %v6098_v45 = vpop.f32.mrb[81].mxu0 }
 0x1fe   : > { %v2796_v60 = vpack.c.bf16 %v2780_v9, %v2780_v9  ;;  %v2242_v38 = vpop.f32.mrb[82].mxu0 }
 0x1ff   : > { %v2797_v29 = vpack.c.bf16 %v2781_v12, %v2781_v12  ;;  %v7555_v26 = vsel %vm3764_vm3, %v3753_v36, 0  ;;  %v6099_v55 = vpop.f32.mrb[83].mxu0  ;;  %v3766_v2 = vsel %vm3764_vm3, %v3745_v42, 0 }
 0x200   : > { %6217 = vmatmul.mubr.msk.bf16.vlgmr.msra.gmra.mrb[120].mxu0 %vm2816_vm2, %v2796_v60 }
 0x201   : > { %6223 = vmatmul.mubr.msk.bf16.vlgmr.msra.gmra.mrb[120].mxu1 %vm2816_vm2, %v2797_v29  ;;  %6227 = vmatpush3.bf16.xpose.msra.mxu0 %v3465_v27 }
 0x202   : > { %6233 = vmatpush3.bf16.xpose.msra.mxu1 %v3511_v31  ;;  %6228 = vmatprep.mubr.msk.bf16.mxu0 %vm6816_vm0, %v6815_v0 }
 0x203   : > { %v2761_v59 = vpop.permute.xlu1 %2760  ;;  %6234 = vmatprep.mubr.msk.bf16.mxu1 %vm6816_vm0, %v6815_v0  ;;  %6238 = vmatprep.subr.bf16.mxu0 %v6815_v0 }
 0x204   : > { %v2766_v10 = vpop.permute.xlu0 %2765  ;;  %v2782_v40 = vmul.f32 %v2761_v59, %v7375_v46  ;;  %6244 = vmatprep.subr.bf16.mxu1 %v6815_v0  ;;  %v2319_v46 = vpop.f32.mrb[84].mxu0 }
 0x205   : > { %v2783_v43 = vmul.f32 %v2766_v10, %v7379_v7  ;;  %v3755_v53 = vpack.c.bf16 %v2319_v46, %v2319_v46  ;;  %v6110_v25 = vpop.f32.mrb[85].mxu0  ;;  %v6116_v7 = vpop.f32.mrb[85].mxu1 }
 0x206   : > { %v2798_v58 = vpack.c.bf16 %v2782_v40, %v2782_v40  ;;  %v2322_v1 = vpop.f32.mrb[86].mxu0  ;;  %v2362_v14 = vpop.f32.mrb[86].mxu1 }
 0x207   : > { %v2799_v63 = vpack.c.bf16 %v2783_v43, %v2783_v43  ;;  %v7571_v44 = vsel %vm3764_vm3, %v3755_v53, 0  ;;  %v6111_v3 = vpop.f32.mrb[87].mxu0  ;;  %v6117_v4 = vpop.f32.mrb[87].mxu1 }
 0x208   : > { %6229 = vmatmul.mubr.msk.bf16.vlgmr.msra.gmra.mrb[124].mxu0 %vm2816_vm2, %v2798_v58  ;;  %v2402_v5 = vpop.f32.mrb[88].mxu0  ;;  %v2442_v6 = vpop.f32.mrb[88].mxu1 }
 0x209   : > { %6235 = vmatmul.mubr.msk.bf16.vlgmr.msra.gmra.mrb[124].mxu1 %vm2816_vm2, %v2799_v63  ;;  %6239 = vmatpush3.bf16.msra.mxu0 %v3766_v2  ;;  %v3757_v8 = vpack.c.bf16 %v2402_v5, %v2402_v5  ;;  %v6122_v16 = vpop.f32.mrb[89].mxu0  ;;  %v3758_v13 = vpack.c.bf16 %v2442_v6, %v2442_v6  ;;  %v6128_v34 = vpop.f32.mrb[89].mxu1 }
 0x20a   : > { %6245 = vmatpush3.bf16.msra.mxu1 %v3812_v51  ;;  %6240 = vmatprep.mubr.msk.bf16.mxu0 %vm6816_vm0, %v6815_v0  ;;  %v2405_v20 = vpop.f32.mrb[90].mxu0  ;;  %v2445_v15 = vpop.f32.mrb[90].mxu1 }
 0x20b   : > { %6246 = vmatprep.mubr.msk.bf16.mxu1 %vm6816_vm0, %v6815_v0  ;;  %6250 = vmatprep.subr.bf16.mxu0 %v6815_v0  ;;  %v7578_v18 = vsel %vm3764_vm3, %v3757_v8, 0  ;;  %v7581_v19 = vsel %vm3764_vm3, %v3758_v13, 0  ;;  %v6123_v21 = vpop.f32.mrb[91].mxu0  ;;  %v6129_v22 = vpop.f32.mrb[91].mxu1 }
 0x20c   : > { %6256 = vmatprep.subr.bf16.mxu1 %v6815_v0  ;;  %v2482_v35 = vpop.f32.mrb[92].mxu0  ;;  %v2522_v23 = vpop.f32.mrb[92].mxu1 }
 0x20d   : > { %v3759_v9 = vpack.c.bf16 %v2482_v35, %v2482_v35  ;;  %v6134_v24 = vpop.f32.mrb[93].mxu0  ;;  %v3760_v12 = vpack.c.bf16 %v2522_v23, %v2522_v23  ;;  %v6140_v33 = vpop.f32.mrb[93].mxu1 }
 0x20e   : > { %v2485_v60 = vpop.f32.mrb[94].mxu0  ;;  %v2525_v27 = vpop.f32.mrb[94].mxu1 }
 0x20f   : > { %v7584_v28 = vsel %vm3764_vm3, %v3759_v9, 0  ;;  %v7587_v29 = vsel %vm3764_vm3, %v3760_v12, 0  ;;  %v6135_v31 = vpop.f32.mrb[95].mxu0  ;;  %v6141_v39 = vpop.f32.mrb[95].mxu1 }
 0x2a3   : > { %v7589_v32 = vpop.f32.mrb[96].mxu0 }
 0x2a4   : > { %v7591_v42 = vpop.f32.mrb[96].mxu1  ;;  %v6146_v36 = vpop.f32.mrb[97].mxu0  ;;  %v3553_v45 = vsel %vm2816_vm2, %v7589_v32, -inf }
 0x2a5   : > { %v6152_v50 = vpop.f32.mrb[97].mxu1  ;;  %v3556_v49 = vsel %vm2816_vm2, %v7591_v42, -inf  ;;  %3554 = vmax.xlane.f32.xlu1 %v3553_v45  ;;  %v2860_v59 = vpop.f32.mrb[98].mxu0 }
 0x2a6   : > { %v2906_v37 = vpop.f32.mrb[98].mxu1  ;;  %3557 = vmax.xlane.f32.xlu0 %v3556_v49  ;;  %v6147_v38 = vpop.f32.mrb[99].mxu0 }
 0x2a7   : > { %v6153_v10 = vpop.f32.mrb[99].mxu1 }
 0x2ab   : > { %v7597_v40 = vpop.f32.mrb[100].mxu0 }
 0x2ac   : > { %v7599_v55 = vpop.f32.mrb[100].mxu1  ;;  %v6158_v43 = vpop.f32.mrb[101].mxu0  ;;  %v3559_v11 = vsel %vm2816_vm2, %v7597_v40, -inf }
 0x2ad   : > { %v6164_v58 = vpop.f32.mrb[101].mxu1  ;;  %v3562_v2 = vsel %vm2816_vm2, %v7599_v55, -inf  ;;  %3560 = vmax.xlane.f32.xlu0 %v3559_v11  ;;  %v2952_v61 = vpop.f32.mrb[102].mxu0 }
 0x2ae   : > { %v2998_v63 = vpop.f32.mrb[102].mxu1  ;;  %3563 = vmax.xlane.f32.xlu1 %v3562_v2  ;;  %v6159_v51 = vpop.f32.mrb[103].mxu0 }
 0x2af   : > { %v6165_v46 = vpop.f32.mrb[103].mxu1 }
 0x2b3   : > { %v7605_v52 = vpop.f32.mrb[104].mxu0 }
 0x2b4   : > { %v7607_v53 = vpop.f32.mrb[104].mxu1  ;;  %v6170_v25 = vpop.f32.mrb[105].mxu0  ;;  %v3565_v54 = vsel %vm2816_vm2, %v7605_v52, -inf }
 0x2b5   : > { %v6176_v7 = vpop.f32.mrb[105].mxu1  ;;  %v3568_v1 = vsel %vm2816_vm2, %v7607_v53, -inf  ;;  %3566 = vmax.xlane.f32.xlu0 %v3565_v54  ;;  %v3044_v14 = vpop.f32.mrb[106].mxu0 }
 0x2b6   : > { %v3090_v3 = vpop.f32.mrb[106].mxu1  ;;  %3569 = vmax.xlane.f32.xlu1 %v3568_v1  ;;  %v6171_v4 = vpop.f32.mrb[107].mxu0 }
 0x2b7   : > { %v6177_v5 = vpop.f32.mrb[107].mxu1 }
 0x2bb   : > { %v7613_v6 = vpop.f32.mrb[108].mxu0 }
 0x2bc   : > { %v7615_v8 = vpop.f32.mrb[108].mxu1  ;;  %v6182_v16 = vpop.f32.mrb[109].mxu0  ;;  %v3571_v13 = vsel %vm2816_vm2, %v7613_v6, -inf }
 0x2bd   : > { %v6188_v34 = vpop.f32.mrb[109].mxu1  ;;  %v3574_v20 = vsel %vm2816_vm2, %v7615_v8, -inf  ;;  %3572 = vmax.xlane.f32.xlu0 %v3571_v13  ;;  %v3136_v15 = vpop.f32.mrb[110].mxu0 }
 0x2be   : > { %v3182_v21 = vpop.f32.mrb[110].mxu1  ;;  %3575 = vmax.xlane.f32.xlu1 %v3574_v20  ;;  %v6183_v22 = vpop.f32.mrb[111].mxu0 }
 0x2bf   : > { %v6189_v35 = vpop.f32.mrb[111].mxu1 }
 0x2c3   : > { %v7621_v23 = vpop.f32.mrb[112].mxu0 }
 0x2c4   : > { %v7623_v9 = vpop.f32.mrb[112].mxu1  ;;  %v6194_v24 = vpop.f32.mrb[113].mxu0  ;;  %v3577_v12 = vsel %vm2816_vm2, %v7621_v23, -inf }
 0x2c5   : > { %v6200_v33 = vpop.f32.mrb[113].mxu1  ;;  %v3580_v60 = vsel %vm2816_vm2, %v7623_v9, -inf  ;;  %3578 = vmax.xlane.f32.xlu0 %v3577_v12  ;;  %v3228_v27 = vpop.f32.mrb[114].mxu0 }
 0x2c6   : > { %v3274_v31 = vpop.f32.mrb[114].mxu1  ;;  %3581 = vmax.xlane.f32.xlu1 %v3580_v60  ;;  %v6195_v39 = vpop.f32.mrb[115].mxu0 }
 0x2c7   : > { %v6201_v36 = vpop.f32.mrb[115].mxu1 }
 0x2cb   : > { %v7629_v45 = vpop.f32.mrb[116].mxu0 }
 0x2cc   : > { %v7631_v50 = vpop.f32.mrb[116].mxu1  ;;  %v6206_v49 = vpop.f32.mrb[117].mxu0  ;;  %v3583_v59 = vsel %vm2816_vm2, %v7629_v45, -inf }
 0x2cd   : > { %v6212_v37 = vpop.f32.mrb[117].mxu1  ;;  %v3586_v38 = vsel %vm2816_vm2, %v7631_v50, -inf  ;;  %3584 = vmax.xlane.f32.xlu0 %v3583_v59  ;;  %v3320_v10 = vpop.f32.mrb[118].mxu0 }
 0x2ce   : > { %v3366_v43 = vpop.f32.mrb[118].mxu1  ;;  %3587 = vmax.xlane.f32.xlu1 %v3586_v38  ;;  %v6207_v11 = vpop.f32.mrb[119].mxu0 }
 0x2cf   : > { %v6213_v58 = vpop.f32.mrb[119].mxu1 }
 0x2d3   : > { %v7637_v2 = vpop.f32.mrb[120].mxu0 }
 0x2d4   : > { %v7639_v61 = vpop.f32.mrb[120].mxu1  ;;  %v6218_v63 = vpop.f32.mrb[121].mxu0  ;;  %v3589_v43 = vsel %vm2816_vm2, %v7637_v2, -inf }
 0x2d5   : > { %v6224_v51 = vpop.f32.mrb[121].mxu1  ;;  %v3412_v46 = vpop.f32.mrb[122].mxu0  ;;  %v3592_v11 = vsel %vm2816_vm2, %v7639_v61, -inf }
 0x2d6   : > { %v3458_v25 = vpop.f32.mrb[122].mxu1  ;;  %v6219_v54 = vpop.f32.mrb[123].mxu0 }
 0x2d7   : > { %v6225_v7 = vpop.f32.mrb[123].mxu1 }
 0x2db   : > { %v7641_v1 = vpop.f32.mrb[124].mxu0 }
 0x2dc   : > { %v7643_v14 = vpop.f32.mrb[124].mxu1  ;;  %v6230_v3 = vpop.f32.mrb[125].mxu0 }
 0x2dd   : > { %v6236_v4 = vpop.f32.mrb[125].mxu1  ;;  %v3504_v5 = vpop.f32.mrb[126].mxu0 }
 0x2de   : > { %v3550_v16 = vpop.f32.mrb[126].mxu1  ;;  %v6231_v13 = vpop.f32.mrb[127].mxu0  ;;  %v3595_v4 = vsel %vm2816_vm2, %v7641_v1, -inf  ;;  %v3598_v5 = vsel %vm2816_vm2, %v7643_v14, -inf }
 0x2df   : > { %v6237_v34 = vpop.f32.mrb[127].mxu1 }
 0x332   : > { %v3555_v20 = vpop.xlane.xlu1 %3554 }
 0x333   : > { %v3558_v15 = vpop.xlane.xlu0 %3557  ;;  %v3601_v21 = vsub.f32 %v7589_v32, %v3555_v20 }
 0x334   : > { %v3602_v22 = vsub.f32 %v7591_v42, %v3558_v15 }
 0x335   : > { %v3617_v35 = vmul.f32 1.442695, %v3601_v21 }
 0x336   : > { %v3619_v24 = vmul.f32 1.442695, %v3602_v22 }
 0x337   : > { %6607 = vpow2.f32 %v3617_v35 }
 0x338   : > { %6609 = vpow2.f32 %v3619_v24 }
 0x33a   : > { %v3561_v12 = vpop.xlane.xlu0 %3560 }
 0x33b   : > { %v3564_v33 = vpop.xlane.xlu1 %3563  ;;  %v3603_v60 = vsub.f32 %v7597_v40, %v3561_v12 }
 0x33c   : > { %v3604_v27 = vsub.f32 %v7599_v55, %v3564_v33 }
 0x33d   : > { %v3621_v31 = vmul.f32 1.442695, %v3603_v60 }
 0x33e   : > { %v3623_v39 = vmul.f32 1.442695, %v3604_v27 }
 0x33f   : > { %6611 = vpow2.f32 %v3621_v31 }
 0x340   : > { %6613 = vpow2.f32 %v3623_v39 }
 0x341   : > { %v7649_v36 = vpop.eup %6607 }
 0x342   : > { %v7651_v49 = vpop.eup %6609  ;;  %v3567_v32 = vpop.xlane.xlu0 %3566  ;;  %v3649_v42 = vsel %vm2816_vm2, %v7649_v36, 0.0 }
 0x343   : > { %v3570_v59 = vpop.xlane.xlu1 %3569  ;;  %v3605_v37 = vsub.f32 %v7605_v52, %v3567_v32  ;;  %v3652_v40 = vsel %vm2816_vm2, %v7651_v49, 0.0  ;;  %3650 = vadd.xlane.f32.xlu0 %v3649_v42 }
 0x344   : > { %v3606_v55 = vsub.f32 %v7607_v53, %v3570_v59  ;;  %3653 = vadd.xlane.f32.xlu1 %v3652_v40 }
 0x345   : > { %v3625_v38 = vmul.f32 1.442695, %v3605_v37 }
 0x346   : > { %v3627_v10 = vmul.f32 1.442695, %v3606_v55 }
 0x347   : > { %6615 = vpow2.f32 %v3625_v38  ;;  %3590 = vmax.xlane.f32.xlu0 %v3589_v43 }
 0x348   : > { %6617 = vpow2.f32 %v3627_v10  ;;  %3593 = vmax.xlane.f32.xlu1 %v3592_v11 }
 0x349   : > { %v7663_v52 = vpop.eup %6611 }
 0x34a   : > { %v7665_v58 = vpop.eup %6613  ;;  %v3573_v63 = vpop.xlane.xlu0 %3572  ;;  %v3655_v53 = vsel %vm2816_vm2, %v7663_v52, 0.0 }
 0x34b   : > { %v3576_v51 = vpop.xlane.xlu1 %3575  ;;  %v3607_v46 = vsub.f32 %v7613_v6, %v3573_v63  ;;  %v3658_v25 = vsel %vm2816_vm2, %v7665_v58, 0.0  ;;  %3656 = vadd.xlane.f32.xlu0 %v3655_v53 }
 0x34c   : > { %v3608_v54 = vsub.f32 %v7615_v8, %v3576_v51  ;;  %3659 = vadd.xlane.f32.xlu1 %v3658_v25 }
 0x34d   : > { %v3629_v7 = vmul.f32 1.442695, %v3607_v46 }
 0x34e   : > { %v3631_v3 = vmul.f32 1.442695, %v3608_v54 }
 0x34f   : > { %6619 = vpow2.f32 %v3629_v7  ;;  %3596 = vmax.xlane.f32.xlu0 %v3595_v4 }
 0x350   : > { %6621 = vpow2.f32 %v3631_v3  ;;  %3599 = vmax.xlane.f32.xlu1 %v3598_v5 }
 0x351   : > { %v7677_v6 = vpop.eup %6615 }
 0x352   : > { %v7679_v16 = vpop.eup %6617  ;;  %v3579_v13 = vpop.xlane.xlu0 %3578  ;;  %v3661_v8 = vsel %vm2816_vm2, %v7677_v6, 0.0 }
 0x353   : > { %v3582_v34 = vpop.xlane.xlu1 %3581  ;;  %v3609_v20 = vsub.f32 %v7621_v23, %v3579_v13  ;;  %v3664_v15 = vsel %vm2816_vm2, %v7679_v16, 0.0  ;;  %3662 = vadd.xlane.f32.xlu0 %v3661_v8 }
 0x354   : > { %v3610_v21 = vsub.f32 %v7623_v9, %v3582_v34  ;;  %3665 = vadd.xlane.f32.xlu1 %v3664_v15 }
 0x355   : > { %v3633_v22 = vmul.f32 1.442695, %v3609_v20 }
 0x356   : > { %v3635_v35 = vmul.f32 1.442695, %v3610_v21 }
 0x357   : > { %6623 = vpow2.f32 %v3633_v22 }
 0x358   : > { %6625 = vpow2.f32 %v3635_v35 }
 0x359   : > { %v7687_v24 = vpop.eup %6619 }
 0x35a   : > { %v7689_v12 = vpop.eup %6621  ;;  %v3585_v33 = vpop.xlane.xlu0 %3584  ;;  %v3667_v60 = vsel %vm2816_vm2, %v7687_v24, 0.0 }
 0x35b   : > { %v3588_v23 = vpop.xlane.xlu1 %3587  ;;  %v3611_v27 = vsub.f32 %v7629_v45, %v3585_v33  ;;  %v3670_v31 = vsel %vm2816_vm2, %v7689_v12, 0.0  ;;  %3668 = vadd.xlane.f32.xlu0 %v3667_v60 }
 0x35c   : > { %v3612_v9 = vsub.f32 %v7631_v50, %v3588_v23  ;;  %3671 = vadd.xlane.f32.xlu1 %v3670_v31 }
 0x35d   : > { %v3637_v39 = vmul.f32 1.442695, %v3611_v27 }
 0x35e   : > { %v3639_v32 = vmul.f32 1.442695, %v3612_v9 }
 0x35f   : > { %6627 = vpow2.f32 %v3637_v39 }
 0x360   : > { %6629 = vpow2.f32 %v3639_v32 }
 0x361   : > { %v7697_v42 = vpop.eup %6623 }
 0x362   : > { %v7699_v59 = vpop.eup %6625  ;;  %v3673_v37 = vsel %vm2816_vm2, %v7697_v42, 0.0 }
 0x363   : > { %v3676_v45 = vsel %vm2816_vm2, %v7699_v59, 0.0  ;;  %3674 = vadd.xlane.f32.xlu0 %v3673_v37 }
 0x364   : > { %3677 = vadd.xlane.f32.xlu1 %v3676_v45 }
 0x369   : > { %v7705_v40 = vpop.eup %6627 }
 0x36a   : > { %v7707_v50 = vpop.eup %6629  ;;  %v3679_v55 = vsel %vm2816_vm2, %v7705_v40, 0.0 }
 0x36b   : > { %v3682_v38 = vsel %vm2816_vm2, %v7707_v50, 0.0  ;;  %3680 = vadd.xlane.f32.xlu0 %v3679_v55 }
 0x36c   : > { %3683 = vadd.xlane.f32.xlu1 %v3682_v38 }
 0x3d0   : > { %v3651_v10 = vpop.xlane.xlu0 %3650 }
 0x3d1   : > { %v3654_v43 = vpop.xlane.xlu1 %3653  ;;  %6631 = vrcp.f32 %v3651_v10 }
 0x3d2   : > { %6633 = vrcp.f32 %v3654_v43 }
 0x3d4   : > { %v3591_v11 = vpop.xlane.xlu0 %3590 }
 0x3d5   : > { %v3594_v63 = vpop.xlane.xlu1 %3593  ;;  %v3613_v53 = vsub.f32 %v7637_v2, %v3591_v11 }
 0x3d6   : > { %v3614_v51 = vsub.f32 %v7639_v61, %v3594_v63 }
 0x3d7   : > { %v3641_v46 = vmul.f32 1.442695, %v3613_v53 }
 0x3d8   : > { %v3643_v25 = vmul.f32 1.442695, %v3614_v51  ;;  %v3657_v54 = vpop.xlane.xlu0 %3656 }
 0x3d9   : > { %6635 = vpow2.f32 %v3641_v46  ;;  %v3660_v7 = vpop.xlane.xlu1 %3659 }
 0x3da   : > { %6637 = vpow2.f32 %v3643_v25 }
 0x3db   : > { %v6632_v3 = vpop.eup %6631  ;;  %6639 = vrcp.f32 %v3660_v7 }
 0x3dc   : > { %v6634_v4 = vpop.eup %6633  ;;  %v3713_v5 = vmul.f32 %v6632_v3, %v7649_v36  ;;  %6641 = vrcp.f32 %v3657_v54  ;;  %v3597_v13 = vpop.xlane.xlu0 %3596 }
 0x3dd   : > { %v3714_v8 = vmul.f32 %v6634_v4, %v7651_v49  ;;  %v3600_v34 = vpop.xlane.xlu1 %3599  ;;  %v3615_v2 = vsub.f32 %v7641_v1, %v3597_v13 }
 0x3de   : > { %v3616_v61 = vsub.f32 %v7643_v14, %v3600_v34  ;;  %v3729_v20 = vpack.c.bf16 %v3713_v5, %v3713_v5 }
 0x3df   : > { %v3645_v15 = vmul.f32 1.442695, %v3615_v2  ;;  %v3730_v21 = vpack.c.bf16 %v3714_v8, %v3714_v8 }
 0x3e0   : > { %v3647_v22 = vmul.f32 1.442695, %v3616_v61  ;;  %6241 = vmatmul.mubr.msk.bf16.vlgmr.msra.gmra.mrb[128].mxu0 %vm2816_vm2, %v3729_v20  ;;  %v3663_v36 = vpop.xlane.xlu0 %3662  ;;  %v6535_v20 = vld [vmem:[%s8078_s6] sm:$0xff]  }
 0x3e1   : > { %6643 = vpow2.f32 %v3645_v15  ;;  %6247 = vmatmul.mubr.msk.bf16.vlgmr.msra.gmra.mrb[128].mxu1 %vm2816_vm2, %v3730_v21  ;;  %v3666_v35 = vpop.xlane.xlu1 %3665  ;;  %6251 = vmatpush3.bf16.msra.mxu0 %v7489_v56 }
 0x3e2   : > { %6645 = vpow2.f32 %v3647_v22  ;;  %6257 = vmatpush3.bf16.msra.mxu1 %v7492_v47  ;;  %6252 = vmatprep.mubr.msk.bf16.mxu0 %vm6816_vm0, %v6815_v0 }
 0x3e3   : > { %v7725_v1 = vpop.eup %6635  ;;  %6647 = vrcp.f32 %v3666_v35  ;;  %6258 = vmatprep.mubr.msk.bf16.mxu1 %vm6816_vm0, %v6815_v0  ;;  %6262 = vmatprep.subr.bf16.mxu0 %v6815_v0 }
 0x3e4   : > { %v7730_v14 = vpop.eup %6637  ;;  %6649 = vrcp.f32 %v3663_v36  ;;  %v3685_v56 = vsel %vm2816_vm2, %v7725_v1, 0.0  ;;  %6268 = vmatprep.subr.bf16.mxu1 %v6815_v0  ;;  %v7826_v36 = vsel %vm2816_vm2, %v6535_v20, 0 }
 0x3e5   : > { %v6640_v47 = vpop.eup %6639  ;;  %v3688_v49 = vsel %vm2816_vm2, %v7730_v14, 0.0  ;;  %3686 = vadd.xlane.f32.xlu0 %v3685_v56  ;;  %v6538_v56 = vld [vmem:[%s8078_s6 + $0x18] sm:$0xff]  }
 0x3e6   : > { %v6642_v33 = vpop.eup %6641  ;;  %v3716_v60 = vmul.f32 %v6640_v47, %v7665_v58  ;;  %3689 = vadd.xlane.f32.xlu1 %v3688_v49  ;;  %v7851_v49 = vsel %vm2816_vm2, %v6538_v56, 0 }
 0x3e7   : > { %v3715_v23 = vmul.f32 %v6642_v33, %v7663_v52  ;;  %v6539_v33 = vld [vmem:[%s8078_s6 + $0x20] sm:$0xff]  }
 0x3e8   : > { %v3732_v27 = vpack.c.bf16 %v3716_v60, %v3716_v60  ;;  %v3669_v31 = vpop.xlane.xlu0 %3668  ;;  %v6540_v60 = vld [vmem:[%s8078_s6 + $0x30] sm:$0xff]  }
 0x3e9   : > { %v3672_v9 = vpop.xlane.xlu1 %3671  ;;  %v3731_v39 = vpack.c.bf16 %v3715_v23, %v3715_v23  ;;  %6651 = vrcp.f32 %v3669_v31 }
 0x3ea   : > { %6259 = vmatmul.mubr.msk.bf16.vlgmr.msra.gmra.mrb[132].mxu1 %vm2816_vm2, %v3732_v27  ;;  %6653 = vrcp.f32 %v3672_v9 }
 0x3eb   : > { %v7740_v32 = vpop.eup %6643  ;;  %6269 = vmatpush3.bf16.msra.mxu1 %v7514_v62  ;;  %6253 = vmatmul.mubr.msk.bf16.vlgmr.msra.gmra.mrb[132].mxu0 %vm2816_vm2, %v3731_v39  ;;  %v7864_v39 = vsel %vm2816_vm2, %v6539_v33, 0 }
 0x3ec   : > { %v7744_v37 = vpop.eup %6645  ;;  %6263 = vmatpush3.bf16.msra.mxu0 %v7511_v57  ;;  %v3691_v52 = vsel %vm2816_vm2, %v7740_v32, 0.0  ;;  %6264 = vmatprep.mubr.msk.bf16.mxu0 %vm6816_vm0, %v6815_v0 }
 0x3ed   : > { %v6648_v58 = vpop.eup %6647  ;;  %v3694_v45 = vsel %vm2816_vm2, %v7744_v37, 0.0  ;;  %3692 = vadd.xlane.f32.xlu0 %v3691_v52  ;;  %6270 = vmatprep.mubr.msk.bf16.mxu1 %vm6816_vm0, %v6815_v0 }
 0x3ee   : > { %v6650_v62 = vpop.eup %6649  ;;  %v3718_v55 = vmul.f32 %v6648_v58, %v7679_v16  ;;  %3695 = vadd.xlane.f32.xlu1 %v3694_v45  ;;  %6274 = vmatprep.subr.bf16.mxu0 %v6815_v0  ;;  %v7867_v58 = vsel %vm2816_vm2, %v6540_v60, 0 }
 0x3ef   : > { %v3717_v57 = vmul.f32 %v6650_v62, %v7677_v6  ;;  %6280 = vmatprep.subr.bf16.mxu1 %v6815_v0 }
 0x3f0   : > { %v3734_v38 = vpack.c.bf16 %v3718_v55, %v3718_v55  ;;  %v3675_v10 = vpop.xlane.xlu0 %3674 }
 0x3f1   : > { %v3678_v43 = vpop.xlane.xlu1 %3677  ;;  %v3733_v11 = vpack.c.bf16 %v3717_v57, %v3717_v57  ;;  %6655 = vrcp.f32 %v3675_v10  ;;  %v6541_v57 = vld [vmem:[%s8078_s6 + $0x28] sm:$0xff]  }
 0x3f2   : > { %6271 = vmatmul.mubr.msk.bf16.vlgmr.msra.gmra.mrb[136].mxu1 %vm2816_vm2, %v3734_v38  ;;  %6657 = vrcp.f32 %v3678_v43  ;;  %v6542_v38 = vld [vmem:[%s8078_s6 + $0x38] sm:$0xff]   ;;  %v7886_v10 = vsel %vm2816_vm2, %v6541_v57, 0 }
 0x3f3   : > { %v6652_v63 = vpop.eup %6651  ;;  %6281 = vmatpush3.bf16.msra.mxu1 %v7536_v30  ;;  %6265 = vmatmul.mubr.msk.bf16.vlgmr.msra.gmra.mrb[136].mxu0 %vm2816_vm2, %v3733_v11  ;;  %v7889_v11 = vsel %vm2816_vm2, %v6542_v38, 0 }
 0x3f4   : > { %v6654_v16 = vpop.eup %6653  ;;  %v3719_v53 = vmul.f32 %v6652_v63, %v7687_v24  ;;  %6275 = vmatpush3.bf16.msra.mxu0 %v7533_v48  ;;  %6276 = vmatprep.mubr.msk.bf16.mxu0 %vm6816_vm0, %v6815_v0 }
 0x3f5   : > { %v3720_v6 = vmul.f32 %v6654_v16, %v7689_v12  ;;  %6282 = vmatprep.mubr.msk.bf16.mxu1 %vm6816_vm0, %v6815_v0  ;;  %6286 = vmatprep.subr.bf16.mxu0 %v6815_v0 }
 0x3f6   : > { %6292 = vmatprep.subr.bf16.mxu1 %v6815_v0  ;;  %v3735_v51 = vpack.c.bf16 %v3719_v53, %v3719_v53 }
 0x3f7   : > { %v3736_v30 = vpack.c.bf16 %v3720_v6, %v3720_v6 }
 0x3f8   : > { %v3681_v46 = vpop.xlane.xlu0 %3680 }
 0x3f9   : > { %v3684_v25 = vpop.xlane.xlu1 %3683  ;;  %6659 = vrcp.f32 %v3681_v46 }
 0x3fa   : > { %6283 = vmatmul.mubr.msk.bf16.vlgmr.msra.gmra.mrb[140].mxu1 %vm2816_vm2, %v3736_v30  ;;  %6661 = vrcp.f32 %v3684_v25 }
 0x3fb   : > { %v6656_v48 = vpop.eup %6655  ;;  %6293 = vmatpush3.bf16.msra.mxu1 %v7558_v41  ;;  %6277 = vmatmul.mubr.msk.bf16.vlgmr.msra.gmra.mrb[140].mxu0 %vm2816_vm2, %v3735_v51 }
 0x3fc   : > { %v6658_v24 = vpop.eup %6657  ;;  %v3721_v12 = vmul.f32 %v6656_v48, %v7697_v42  ;;  %6287 = vmatpush3.bf16.msra.mxu0 %v7555_v26  ;;  %6288 = vmatprep.mubr.msk.bf16.mxu0 %vm6816_vm0, %v6815_v0 }
 0x3fd   : > { %v3722_v54 = vmul.f32 %v6658_v24, %v7699_v59  ;;  %6294 = vmatprep.mubr.msk.bf16.mxu1 %vm6816_vm0, %v6815_v0  ;;  %6298 = vmatprep.subr.bf16.mxu0 %v6815_v0 }
 0x3fe   : > { %6304 = vmatprep.subr.bf16.mxu1 %v6815_v0  ;;  %v3737_v41 = vpack.c.bf16 %v3721_v12, %v3721_v12 }
 0x3ff   : > { %v3738_v7 = vpack.c.bf16 %v3722_v54, %v3722_v54 }
 0x402   : > { %6295 = vmatmul.mubr.msk.bf16.vlgmr.msra.gmra.mrb[144].mxu1 %vm2816_vm2, %v3738_v7 }
 0x403   : > { %v6660_v3 = vpop.eup %6659  ;;  %6289 = vmatmul.mubr.msk.bf16.vlgmr.msra.gmra.mrb[144].mxu0 %vm2816_vm2, %v3737_v41  ;;  %6305 = vmatpush3.bf16.msra.mxu1 %v7574_v17 }
 0x404   : > { %v6662_v26 = vpop.eup %6661  ;;  %v3723_v42 = vmul.f32 %v6660_v3, %v7705_v40  ;;  %6299 = vmatpush3.bf16.msra.mxu0 %v7571_v44  ;;  %6300 = vmatprep.mubr.msk.bf16.mxu0 %vm6816_vm0, %v6815_v0 }
 0x405   : > { %v3724_v59 = vmul.f32 %v6662_v26, %v7707_v50  ;;  %6306 = vmatprep.mubr.msk.bf16.mxu1 %vm6816_vm0, %v6815_v0  ;;  %6310 = vmatprep.subr.bf16.mxu0 %v6815_v0 }
 0x406   : > { %6316 = vmatprep.subr.bf16.mxu1 %v6815_v0  ;;  %v3739_v4 = vpack.c.bf16 %v3723_v42, %v3723_v42 }
 0x407   : > { %v3740_v5 = vpack.c.bf16 %v3724_v59, %v3724_v59 }
 0x40a   : > { %6307 = vmatmul.mubr.msk.bf16.vlgmr.msra.gmra.mrb[148].mxu1 %vm2816_vm2, %v3740_v5 }
 0x40b   : > { %6301 = vmatmul.mubr.msk.bf16.vlgmr.msra.gmra.mrb[148].mxu0 %vm2816_vm2, %v3739_v4  ;;  %6317 = vmatpush3.bf16.msra.mxu1 %v7581_v19 }
 0x40c   : > { %6311 = vmatpush3.bf16.msra.mxu0 %v7578_v18  ;;  %6312 = vmatprep.mubr.msk.bf16.mxu0 %vm6816_vm0, %v6815_v0 }
 0x40d   : > { %6318 = vmatprep.mubr.msk.bf16.mxu1 %vm6816_vm0, %v6815_v0  ;;  %6322 = vmatprep.subr.bf16.mxu0 %v6815_v0 }
 0x40e   : > { %6328 = vmatprep.subr.bf16.mxu1 %v6815_v0 }
 0x472   : > { %v3687_v44 = vpop.xlane.xlu0 %3686 }
 0x473   : > { %v3690_v17 = vpop.xlane.xlu1 %3689  ;;  %6663 = vrcp.f32 %v3687_v44 }
 0x474   : > { %6665 = vrcp.f32 %v3690_v17 }
 0x47a   : > { %v3693_v40 = vpop.xlane.xlu0 %3692 }
 0x47b   : > { %v3696_v50 = vpop.xlane.xlu1 %3695  ;;  %6667 = vrcp.f32 %v3693_v40 }
 0x47c   : > { %6669 = vrcp.f32 %v3696_v50 }
 0x47d   : > { %v6664_v19 = vpop.eup %6663 }
 0x47e   : > { %v6666_v18 = vpop.eup %6665  ;;  %v3725_v13 = vmul.f32 %v6664_v19, %v7725_v1 }
 0x47f   : > { %v3726_v8 = vmul.f32 %v6666_v18, %v7730_v14  ;;  %v6537_v14 = vld [vmem:[%s8078_s6 + $0x8] sm:$0xff]  }
 0x480   : > { %v3741_v34 = vpack.c.bf16 %v3725_v13, %v3725_v13  ;;  %v7848_v47 = vsel %vm2816_vm2, %v6537_v14, 0 }
 0x481   : > { %v3742_v2 = vpack.c.bf16 %v3726_v8, %v3726_v8 }
 0x482   : > { %6313 = vmatmul.mubr.msk.bf16.vlgmr.msra.gmra.mrb[152].mxu0 %vm2816_vm2, %v3741_v34 }
 0x483   : > { %6319 = vmatmul.mubr.msk.bf16.vlgmr.msra.gmra.mrb[152].mxu1 %vm2816_vm2, %v3742_v2  ;;  %6323 = vmatpush3.bf16.msra.mxu0 %v7584_v28  ;;  %v6536_v28 = vld [vmem:[%s8078_s6 + $0x10] sm:$0xff]  }
 0x484   : > { %6329 = vmatpush3.bf16.msra.mxu1 %v7587_v29  ;;  %6324 = vmatprep.mubr.msk.bf16.mxu0 %vm6816_vm0, %v6815_v0  ;;  %v7830_v1 = vsel %vm2816_vm2, %v6536_v28, 0 }
 0x485   : > { %v6668_v61 = vpop.eup %6667  ;;  %6330 = vmatprep.mubr.msk.bf16.mxu1 %vm6816_vm0, %v6815_v0  ;;  %6334 = vmatprep.subr.bf16.mxu0 %v6815_v0 }
 0x486   : > { %v6670_v15 = vpop.eup %6669  ;;  %v3727_v21 = vmul.f32 %v6668_v61, %v7740_v32  ;;  %6342 = vmatprep.subr.bf16.mxu1 %v6815_v0 }
 0x487   : > { %v3728_v29 = vmul.f32 %v6670_v15, %v7744_v37 }
 0x488   : > { %v3743_v22 = vpack.c.bf16 %v3727_v21, %v3727_v21 }
 0x489   : > { %v3744_v35 = vpack.c.bf16 %v3728_v29, %v3728_v29 }
 0x48a   : > { %6325 = vmatmul.mubr.msk.bf16.vlgmr.msra.gmra.mrb[156].mxu0 %vm2816_vm2, %v3743_v22 }
 0x48b   : > { %6331 = vmatmul.mubr.msk.bf16.vlgmr.msra.gmra.mrb[156].mxu1 %vm2816_vm2, %v3744_v35  ;;  %6338 = vmatprep.mubr.msk.bf16.mxu0 %vm6816_vm0, %v6815_v0 }
 0x48c   : > { %6335 = vmatpush3.bf16.xpose.msra.mxu0 %v7826_v36  ;;  %6346 = vmatprep.mubr.msk.bf16.mxu1 %vm6816_vm0, %v6815_v0 }
 0x48d   : > { %6343 = vmatpush3.bf16.xpose.msra.mxu1 %v7830_v1  ;;  %6336 = vmatprep.subr.bf16.mxu0 %v6815_v0 }
 0x48e   : > { %6344 = vmatprep.subr.bf16.mxu1 %v6815_v0 }
 0x494   : > { %6337 = vmatpush3.bf16.xpose.msra.mxu0 %v7848_v47 }
 0x495   : > { %6345 = vmatpush3.bf16.xpose.msra.mxu1 %v7851_v49  ;;  %6350 = vmatprep.subr.bf16.mxu0 %v6815_v0 }
 0x496   : > { %6358 = vmatprep.subr.bf16.mxu1 %v6815_v0 }
 0x4b3   : > { %v3802_v23 = vpop.f32.mrb[128].mxu0 }
 0x4b4   : > { %v4498_v27 = vpack.c.bf16 %v3802_v23, %v3802_v23  ;;  %v3848_v31 = vpop.f32.mrb[128].mxu1  ;;  %v6242_v9 = vpop.f32.mrb[129].mxu0 }
 0x4b5   : > { %v4499_v32 = vpack.c.bf16 %v3848_v31, %v3848_v31  ;;  %v6248_v37 = vpop.f32.mrb[129].mxu1  ;;  %v3805_v52 = vpop.f32.mrb[130].mxu0 }
 0x4b6   : > { %v3851_v45 = vpop.f32.mrb[130].mxu1  ;;  %v6243_v62 = vpop.f32.mrb[131].mxu0  ;;  %6339 = vmatmul.mubr.msk.bf16.vlgmr.msra.gmra.mrb[160].mxu0 %vm2816_vm2, %v4498_v27 }
 0x4b7   : > { %v6249_v55 = vpop.f32.mrb[131].mxu1  ;;  %6347 = vmatmul.mubr.msk.bf16.vlgmr.msra.gmra.mrb[160].mxu1 %vm2816_vm2, %v4499_v32  ;;  %6351 = vmatpush3.bf16.xpose.msra.mxu0 %v7864_v39 }
 0x4b8   : > { %6359 = vmatpush3.bf16.xpose.msra.mxu1 %v7867_v58  ;;  %6352 = vmatprep.subr.bf16.mxu0 %v6815_v0 }
 0x4b9   : > { %6360 = vmatprep.subr.bf16.mxu1 %v6815_v0  ;;  %6354 = vmatprep.mubr.msk.bf16.mxu0 %vm6816_vm0, %v6815_v0 }
 0x4ba   : > { %6362 = vmatprep.mubr.msk.bf16.mxu1 %vm6816_vm0, %v6815_v0 }
 0x4bd   : > { %v3940_v43 = vpop.f32.mrb[132].mxu1 }
 0x4be   : > { %v3894_v63 = vpop.f32.mrb[132].mxu0  ;;  %v6260_v16 = vpop.f32.mrb[133].mxu1  ;;  %v4501_v48 = vpack.c.bf16 %v3940_v43, %v3940_v43 }
 0x4bf   : > { %v6254_v53 = vpop.f32.mrb[133].mxu0  ;;  %v3943_v6 = vpop.f32.mrb[134].mxu1  ;;  %6353 = vmatpush3.bf16.xpose.msra.mxu0 %v7886_v10  ;;  %v4500_v25 = vpack.c.bf16 %v3894_v63, %v3894_v63 }
 0x4c0   : > { %v3897_v30 = vpop.f32.mrb[134].mxu0  ;;  %v6261_v51 = vpop.f32.mrb[135].mxu1  ;;  %6361 = vmatpush3.bf16.xpose.msra.mxu1 %v7889_v11  ;;  %6366 = vmatprep.subr.bf16.mxu0 %v6815_v0 }
 0x4c1   : > { %v6255_v46 = vpop.f32.mrb[135].mxu0  ;;  %6374 = vmatprep.subr.bf16.mxu1 %v6815_v0 }
 0x4c5   : > { %v4032_v24 = vpop.f32.mrb[136].mxu1 }
 0x4c6   : > { %v3986_v12 = vpop.f32.mrb[136].mxu0  ;;  %v6272_v54 = vpop.f32.mrb[137].mxu1  ;;  %6355 = vmatmul.mubr.msk.bf16.vlgmr.msra.gmra.mrb[164].mxu0 %vm2816_vm2, %v4500_v25  ;;  %v4503_v13 = vpack.c.bf16 %v4032_v24, %v4032_v24 }
 0x4c7   : > { %v6266_v41 = vpop.f32.mrb[137].mxu0  ;;  %v4035_v7 = vpop.f32.mrb[138].mxu1  ;;  %6363 = vmatmul.mubr.msk.bf16.vlgmr.msra.gmra.mrb[164].mxu1 %vm2816_vm2, %v4501_v48  ;;  %6367 = vmatpush3.bf16.xpose.msra.mxu0 %v7826_v36  ;;  %v4502_v18 = vpack.c.bf16 %v3986_v12, %v3986_v12 }
 0x4c8   : > { %v3989_v3 = vpop.f32.mrb[138].mxu0  ;;  %v6273_v26 = vpop.f32.mrb[139].mxu1  ;;  %6375 = vmatpush3.bf16.xpose.msra.mxu1 %v7830_v1  ;;  %6368 = vmatprep.subr.bf16.mxu0 %v6815_v0 }
 0x4c9   : > { %v6267_v42 = vpop.f32.mrb[139].mxu0  ;;  %6376 = vmatprep.subr.bf16.mxu1 %v6815_v0  ;;  %6370 = vmatprep.mubr.msk.bf16.mxu0 %vm6816_vm0, %v6815_v0 }
 0x4ca   : > { %6378 = vmatprep.mubr.msk.bf16.mxu1 %vm6816_vm0, %v6815_v0 }
 0x4cd   : > { %v4124_v59 = vpop.f32.mrb[140].mxu1 }
 0x4ce   : > { %v4078_v4 = vpop.f32.mrb[140].mxu0  ;;  %v6284_v5 = vpop.f32.mrb[141].mxu1  ;;  %v4505_v31 = vpack.c.bf16 %v4124_v59, %v4124_v59 }
 0x4cf   : > { %v6278_v44 = vpop.f32.mrb[141].mxu0  ;;  %v4127_v17 = vpop.f32.mrb[142].mxu1  ;;  %6369 = vmatpush3.bf16.xpose.msra.mxu0 %v7848_v47  ;;  %v4504_v27 = vpack.c.bf16 %v4078_v4, %v4078_v4  ;;  %v7982_v4 = vld [vmem:[%s8079_s7] ss:$0 sm:$0xff] }
 0x4d0   : > { %v4081_v40 = vpop.f32.mrb[142].mxu0  ;;  %v6285_v50 = vpop.f32.mrb[143].mxu1  ;;  %6377 = vmatpush3.bf16.xpose.msra.mxu1 %v7851_v49  ;;  %6382 = vmatprep.subr.bf16.mxu0 %v6815_v0 }
 0x4d1   : > { %v6279_v19 = vpop.f32.mrb[143].mxu0  ;;  %6390 = vmatprep.subr.bf16.mxu1 %v6815_v0 }
 0x4d5   : > { %v4216_v8 = vpop.f32.mrb[144].mxu1 }
 0x4d6   : > { %v4170_v34 = vpop.f32.mrb[144].mxu0  ;;  %v6296_v2 = vpop.f32.mrb[145].mxu1  ;;  %6371 = vmatmul.mubr.msk.bf16.vlgmr.msra.gmra.mrb[168].mxu0 %vm2816_vm2, %v4502_v18  ;;  %v4507_v32 = vpack.c.bf16 %v4216_v8, %v4216_v8 }
 0x4d7   : > { %v6290_v61 = vpop.f32.mrb[145].mxu0  ;;  %v4219_v20 = vpop.f32.mrb[146].mxu1  ;;  %6379 = vmatmul.mubr.msk.bf16.vlgmr.msra.gmra.mrb[168].mxu1 %vm2816_vm2, %v4503_v13  ;;  %6383 = vmatpush3.bf16.xpose.msra.mxu0 %v7864_v39  ;;  %v4506_v9 = vpack.c.bf16 %v4170_v34, %v4170_v34  ;;  %v6679_v13 = vld [vmem:[%s7017_s19] sm:$0xff] }
 0x4d8   : > { %v4173_v15 = vpop.f32.mrb[146].mxu0  ;;  %v6297_v21 = vpop.f32.mrb[147].mxu1  ;;  %6391 = vmatpush3.bf16.xpose.msra.mxu1 %v7867_v58  ;;  %6384 = vmatprep.subr.bf16.mxu0 %v6815_v0 }
 0x4d9   : > { %v6291_v28 = vpop.f32.mrb[147].mxu0  ;;  %6392 = vmatprep.subr.bf16.mxu1 %v6815_v0  ;;  %6386 = vmatprep.mubr.msk.bf16.mxu0 %vm6816_vm0, %v6815_v0 }
 0x4da   : > { %6394 = vmatprep.mubr.msk.bf16.mxu1 %vm6816_vm0, %v6815_v0 }
 0x4dd   : > { %v4308_v29 = vpop.f32.mrb[148].mxu1 }
 0x4de   : > { %v4262_v22 = vpop.f32.mrb[148].mxu0  ;;  %v6308_v35 = vpop.f32.mrb[149].mxu1  ;;  %v4509_v52 = vpack.c.bf16 %v4308_v29, %v4308_v29 }
 0x4df   : > { %v6302_v14 = vpop.f32.mrb[149].mxu0  ;;  %v4311_v56 = vpop.f32.mrb[150].mxu1  ;;  %6385 = vmatpush3.bf16.xpose.msra.mxu0 %v7886_v10  ;;  %v4508_v37 = vpack.c.bf16 %v4262_v22, %v4262_v22 }
 0x4e0   : > { %v4265_v33 = vpop.f32.mrb[150].mxu0  ;;  %v6309_v60 = vpop.f32.mrb[151].mxu1  ;;  %6393 = vmatpush3.bf16.xpose.msra.mxu1 %v7889_v11  ;;  %6398 = vmatprep.subr.bf16.mxu0 %v6815_v0 }
 0x4e1   : > { %v6303_v23 = vpop.f32.mrb[151].mxu0  ;;  %6406 = vmatprep.subr.bf16.mxu1 %v6815_v0 }
 0x4e6   : > { %6387 = vmatmul.mubr.msk.bf16.vlgmr.msra.gmra.mrb[172].mxu0 %vm2816_vm2, %v4504_v27 }
 0x4e7   : > { %6395 = vmatmul.mubr.msk.bf16.vlgmr.msra.gmra.mrb[172].mxu1 %vm2816_vm2, %v4505_v31  ;;  %6399 = vmatpush3.bf16.xpose.msra.mxu0 %v7826_v36 }
 0x4e8   : > { %6407 = vmatpush3.bf16.xpose.msra.mxu1 %v7830_v1  ;;  %6400 = vmatprep.subr.bf16.mxu0 %v6815_v0 }
 0x4e9   : > { %6408 = vmatprep.subr.bf16.mxu1 %v6815_v0  ;;  %6402 = vmatprep.mubr.msk.bf16.mxu0 %vm6816_vm0, %v6815_v0 }
 0x4ea   : > { %6410 = vmatprep.mubr.msk.bf16.mxu1 %vm6816_vm0, %v6815_v0 }
 0x4ef   : > { %6401 = vmatpush3.bf16.xpose.msra.mxu0 %v7848_v47 }
 0x4f0   : > { %6409 = vmatpush3.bf16.xpose.msra.mxu1 %v7851_v49  ;;  %6414 = vmatprep.subr.bf16.mxu0 %v6815_v0 }
 0x4f1   : > { %6422 = vmatprep.subr.bf16.mxu1 %v6815_v0 }
 0x4f6   : > { %6403 = vmatmul.mubr.msk.bf16.vlgmr.msra.gmra.mrb[176].mxu0 %vm2816_vm2, %v4506_v9 }
 0x4f7   : > { %6411 = vmatmul.mubr.msk.bf16.vlgmr.msra.gmra.mrb[176].mxu1 %vm2816_vm2, %v4507_v32  ;;  %6415 = vmatpush3.bf16.xpose.msra.mxu0 %v7864_v39 }
 0x4f8   : > { %6423 = vmatpush3.bf16.xpose.msra.mxu1 %v7867_v58  ;;  %6416 = vmatprep.subr.bf16.mxu0 %v6815_v0 }
 0x4f9   : > { %6424 = vmatprep.subr.bf16.mxu1 %v6815_v0  ;;  %6418 = vmatprep.mubr.msk.bf16.mxu0 %vm6816_vm0, %v6815_v0 }
 0x4fa   : > { %6426 = vmatprep.mubr.msk.bf16.mxu1 %vm6816_vm0, %v6815_v0 }
 0x4ff   : > { %6417 = vmatpush3.bf16.xpose.msra.mxu0 %v7886_v10 }
 0x500   : > { %6425 = vmatpush3.bf16.xpose.msra.mxu1 %v7889_v11  ;;  %6430 = vmatprep.subr.bf16.mxu0 %v6815_v0 }
 0x501   : > { %6438 = vmatprep.subr.bf16.mxu1 %v6815_v0 }
 0x506   : > { %6419 = vmatmul.mubr.msk.bf16.vlgmr.msra.gmra.mrb[180].mxu0 %vm2816_vm2, %v4508_v37 }
 0x507   : > { %6427 = vmatmul.mubr.msk.bf16.vlgmr.msra.gmra.mrb[180].mxu1 %vm2816_vm2, %v4509_v52  ;;  %6431 = vmatpush3.bf16.xpose.msra.mxu0 %v7826_v36 }
 0x508   : > { %6439 = vmatpush3.bf16.xpose.msra.mxu1 %v7830_v1  ;;  %6432 = vmatprep.subr.bf16.mxu0 %v6815_v0 }
 0x509   : > { %6440 = vmatprep.subr.bf16.mxu1 %v6815_v0  ;;  %6434 = vmatprep.mubr.msk.bf16.mxu0 %vm6816_vm0, %v6815_v0 }
 0x50a   : > { %6442 = vmatprep.mubr.msk.bf16.mxu1 %vm6816_vm0, %v6815_v0 }
 0x50f   : > { %6433 = vmatpush3.bf16.xpose.msra.mxu0 %v7848_v47 }
 0x510   : > { %6441 = vmatpush3.bf16.xpose.msra.mxu1 %v7851_v49  ;;  %6446 = vmatprep.subr.bf16.mxu0 %v6815_v0 }
 0x511   : > { %6454 = vmatprep.subr.bf16.mxu1 %v6815_v0 }
 0x555   : > { %v4354_v36 = vpop.f32.mrb[152].mxu0 }
 0x556   : > { %v4510_v1 = vpack.c.bf16 %v4354_v36, %v4354_v36  ;;  %v4400_v45 = vpop.f32.mrb[152].mxu1  ;;  %v6314_v62 = vpop.f32.mrb[153].mxu0  ;;  %v6680_v36 = vld [vmem:[%s7017_s19 + $0x8] sm:$0xff] }
 0x557   : > { %v4511_v55 = vpack.c.bf16 %v4400_v45, %v4400_v45  ;;  %v6320_v57 = vpop.f32.mrb[153].mxu1  ;;  %v4357_v38 = vpop.f32.mrb[154].mxu0 }
 0x558   : > { %v4403_v43 = vpop.f32.mrb[154].mxu1  ;;  %v6315_v63 = vpop.f32.mrb[155].mxu0  ;;  %6435 = vmatmul.mubr.msk.bf16.vlgmr.msra.gmra.mrb[184].mxu0 %vm2816_vm2, %v4510_v1 }
 0x559   : > { %v6321_v16 = vpop.f32.mrb[155].mxu1  ;;  %6443 = vmatmul.mubr.msk.bf16.vlgmr.msra.gmra.mrb[184].mxu1 %vm2816_vm2, %v4511_v55  ;;  %6447 = vmatpush3.bf16.xpose.msra.mxu0 %v7864_v39 }
 0x55a   : > { %6455 = vmatpush3.bf16.xpose.msra.mxu1 %v7867_v58  ;;  %6448 = vmatprep.subr.bf16.mxu0 %v6815_v0 }
 0x55b   : > { %6456 = vmatprep.subr.bf16.mxu1 %v6815_v0  ;;  %6450 = vmatprep.mubr.msk.bf16.mxu0 %vm6816_vm0, %v6815_v0 }
 0x55c   : > { %6458 = vmatprep.mubr.msk.bf16.mxu1 %vm6816_vm0, %v6815_v0 }
 0x55d   : > { %v4446_v47 = vpop.f32.mrb[156].mxu0 }
 0x55e   : > { %v4492_v49 = vpop.f32.mrb[156].mxu1  ;;  %v6326_v53 = vpop.f32.mrb[157].mxu0  ;;  %v4512_v58 = vpack.c.bf16 %v4446_v47, %v4446_v47 }
 0x55f   : > { %v6332_v6 = vpop.f32.mrb[157].mxu1  ;;  %v4449_v30 = vpop.f32.mrb[158].mxu0  ;;  %v4513_v25 = vpack.c.bf16 %v4492_v49, %v4492_v49 }
 0x560   : > { %v4495_v51 = vpop.f32.mrb[158].mxu1  ;;  %v6327_v46 = vpop.f32.mrb[159].mxu0 }
 0x561   : > { %v6333_v39 = vpop.f32.mrb[159].mxu1  ;;  %6449 = vmatpush3.bf16.xpose.msra.mxu0 %v7886_v10 }
 0x562   : > { %6457 = vmatpush3.bf16.xpose.msra.mxu1 %v7889_v11 }
 0x568   : > { %6451 = vmatmul.mubr.msk.bf16.vlgmr.msra.gmra.mrb[188].mxu0 %vm2816_vm2, %v4512_v58 }
 0x569   : > { %6459 = vmatmul.mubr.msk.bf16.vlgmr.msra.gmra.mrb[188].mxu1 %vm2816_vm2, %v4513_v25 }
 0x589   : > { %v4567_v48 = vpop.f32.mrb[160].mxu0 }
 0x58a   : > { %v4626_v0 = vpop.f32.mrb[160].mxu1  ;;  %v6340_v24 = vpop.f32.mrb[161].mxu0 }
 0x58b   : > { %v5266_v12 = vadd.f32 %v4626_v0, %v4567_v48  ;;  %v6348_v54 = vpop.f32.mrb[161].mxu1  ;;  %v4570_v41 = vpop.f32.mrb[162].mxu0 }
 0x58c   : > { %v4629_v7 = vpop.f32.mrb[162].mxu1  ;;  %v6341_v3 = vpop.f32.mrb[163].mxu0 }
 0x58d   : > { %v6349_v26 = vpop.f32.mrb[163].mxu1 }
 0x599   : > { %v4685_v42 = vpop.f32.mrb[164].mxu0 }
 0x59a   : > { %v5270_v10 = vadd.f32 %v5266_v12, %v4685_v42  ;;  %v4744_v59 = vpop.f32.mrb[164].mxu1  ;;  %v6356_v11 = vpop.f32.mrb[165].mxu0  ;;  %v6681_v12 = vld [vmem:[%s7017_s19 + $0x10] sm:$0xff] }
 0x59b   : > { %v6364_v5 = vpop.f32.mrb[165].mxu1  ;;  %v4688_v44 = vpop.f32.mrb[166].mxu0 }
 0x59c   : > { %v5274_v17 = vadd.f32 %v5270_v10, %v4744_v59  ;;  %v4747_v40 = vpop.f32.mrb[166].mxu1  ;;  %v6357_v50 = vpop.f32.mrb[167].mxu0 }
 0x59d   : > { %v6365_v19 = vpop.f32.mrb[167].mxu1 }
 0x59e   : > { %v5285_v18 = vadd.f32 %v7982_v4, %v5274_v17 }
 0x5a0   : > { %v5289_v8 = vadd.f32 %v6679_v13, %v5285_v18 }
 0x5a2   : > { %v5293_v34 = vsel %vm520_vm1, %v5289_v8, 0.0 }
 0x5a3   : > { %5294 = vadd.xlane.f32.xlu0 %v5293_v34 }
 0x5a9   : > { %v4787_v2 = vpop.f32.mrb[168].mxu0 }
 0x5aa   : > { %v4830_v61 = vpop.f32.mrb[168].mxu1  ;;  %v6372_v20 = vpop.f32.mrb[169].mxu0 }
 0x5ab   : > { %v5267_v15 = vadd.f32 %v4830_v61, %v4787_v2  ;;  %v6380_v21 = vpop.f32.mrb[169].mxu1  ;;  %v4790_v28 = vpop.f32.mrb[170].mxu0 }
 0x5ac   : > { %v4833_v29 = vpop.f32.mrb[170].mxu1  ;;  %v6373_v22 = vpop.f32.mrb[171].mxu0 }
 0x5ad   : > { %v6381_v35 = vpop.f32.mrb[171].mxu1 }
 0x5b9   : > { %v4873_v14 = vpop.f32.mrb[172].mxu0 }
 0x5ba   : > { %v5271_v56 = vadd.f32 %v5267_v15, %v4873_v14  ;;  %v4916_v33 = vpop.f32.mrb[172].mxu1  ;;  %v6388_v60 = vpop.f32.mrb[173].mxu0  ;;  %v6682_v14 = vld [vmem:[%s7017_s19 + $0x18] sm:$0xff]  ;;  %s440_s19 = sand.u32 1, %s6801_s18  }
 0x5bb   : > { %v6396_v23 = vpop.f32.mrb[173].mxu1  ;;  %v4876_v27 = vpop.f32.mrb[174].mxu0  ;;  %s5502_s30 = sshll.u32 %s440_s19, 5  ;;  %s8030_s22 = scalar_lea.sflag [#allocation4], %s440_s19 }
 0x5bc   : > { %v5275_v31 = vadd.f32 %v5271_v56, %v4916_v33  ;;  %v4919_v9 = vpop.f32.mrb[174].mxu1  ;;  %v6389_v32 = vpop.f32.mrb[175].mxu0  ;;  %s8009_s17 = scalar_lea.vmem [#allocation7], %s5502_s30 }
 0x5bd   : > { %v6397_v37 = vpop.f32.mrb[175].mxu1  ;;  %s5386_s13 = sshll.u32 %s8009_s17, 4  ;;  %s8024_s13 = int_to_ptr.vmem [resolvable:$true] %s5386_s13 }
 0x5be   : > { %v5286_v52 = vadd.f32 %v7982_v4, %v5275_v31  ;;  %s6739_s26 = scalar_lea.vmem %s8024_s13, 512  ;;  %p6746_p4 = scmp.lt.s32.totalorder %s8024_s13, %s6744_s24 }
 0x5bf   : > { %p6740_p10 = scmp.ne.s32.totalorder %s8024_s13, %s6739_s26  ;;  %p6747_p7 = scmp.lt.s32.totalorder %s6745_s25, %s6739_s26 }
 0x5c0   : > { %v5290_v1 = vadd.f32 %v6680_v36, %v5286_v52 }
 0x5c1   : > { %p6741_p2 = pnand %p6740_p10, %p8106_p1  ;;  %p6748_p8 = por %p6747_p7, %p6746_p4 }
 0x5c2   : > { %v5296_v45 = vsel %vm520_vm1, %v5290_v1, 0.0 }
 0x5c3   : > { %5297 = vadd.xlane.f32.xlu1 %v5296_v45  ;;  %p6742_p3 = pneg %p6741_p2 }
 0x5c5   : > { %p6749_p11 = pnand %p6748_p8, %p6742_p3 }
 0x5c9   : > { %v4959_v62 = vpop.f32.mrb[176].mxu0 }
 0x5ca   : > { %v5002_v55 = vpop.f32.mrb[176].mxu1  ;;  %v6404_v57 = vpop.f32.mrb[177].mxu0 }
 0x5cb   : > { %v5268_v38 = vadd.f32 %v5002_v55, %v4959_v62  ;;  %v6412_v43 = vpop.f32.mrb[177].mxu1  ;;  %v4962_v63 = vpop.f32.mrb[178].mxu0 }
 0x5cc   : > { %v5005_v16 = vpop.f32.mrb[178].mxu1  ;;  %v6405_v47 = vpop.f32.mrb[179].mxu0 }
 0x5cd   : > { %v6413_v49 = vpop.f32.mrb[179].mxu1  ;;  %v5639_v16 = vld [vmem:[%s8082_s10] ss:$0 sm:$0xff] }
 0x5d9   : > { %v5045_v53 = vpop.f32.mrb[180].mxu0 }
 0x5da   : > { %v5272_v6 = vadd.f32 %v5268_v38, %v5045_v53  ;;  %v5088_v30 = vpop.f32.mrb[180].mxu1  ;;  %v6420_v51 = vpop.f32.mrb[181].mxu0  ;;  %v5638_v38 = vld [vmem:[%s8081_s9] ss:$0 sm:$0xff] }
 0x5db   : > { %v6428_v46 = vpop.f32.mrb[181].mxu1  ;;  %v5048_v39 = vpop.f32.mrb[182].mxu0 }
 0x5dc   : > { %v5276_v58 = vadd.f32 %v5272_v6, %v5088_v30  ;;  %v5091_v25 = vpop.f32.mrb[182].mxu1  ;;  %v6421_v48 = vpop.f32.mrb[183].mxu0 }
 0x5dd   : > { %v6429_v0 = vpop.f32.mrb[183].mxu1 }
 0x5de   : > { %v5287_v24 = vadd.f32 %v7982_v4, %v5276_v58 }
 0x5e0   : > { %v5291_v54 = vadd.f32 %v6681_v12, %v5287_v24 }
 0x5e2   : > { %v5299_v41 = vsel %vm520_vm1, %v5291_v54, 0.0 }
 0x5e3   : > { %5300 = vadd.xlane.f32.xlu0 %v5299_v41 }
 0x62b   : > { %v5131_v7 = vpop.f32.mrb[184].mxu0 }
 0x62c   : > { %v5174_v3 = vpop.f32.mrb[184].mxu1  ;;  %v6436_v26 = vpop.f32.mrb[185].mxu0 }
 0x62d   : > { %v5269_v42 = vadd.f32 %v5174_v3, %v5131_v7  ;;  %v6444_v10 = vpop.f32.mrb[185].mxu1  ;;  %v5134_v59 = vpop.f32.mrb[186].mxu0 }
 0x62e   : > { %v5177_v11 = vpop.f32.mrb[186].mxu1  ;;  %v6437_v5 = vpop.f32.mrb[187].mxu0 }
 0x62f   : > { %v6445_v44 = vpop.f32.mrb[187].mxu1 }
 0x630   : > { %v5295_v17 = vpop.xlane.xlu0 %5294 }
 0x631   : > { %v5306_v40 = vmul.f32 0.03125, %v5295_v17 }
 0x633   : > { %v5310_v50 = vsub.f32 %v5289_v8, %v5306_v40 }
 0x635   : > { %v5314_v19 = vmul.f32 %v5310_v50, %v5310_v50 }
 0x637   : > { %v5318_v18 = vsel %vm520_vm1, %v5314_v19, 0.0 }
 0x638   : > { %5319 = vadd.xlane.f32.xlu0 %v5318_v18 }
 0x63b   : > { %v5217_v13 = vpop.f32.mrb[188].mxu0 }
 0x63c   : > { %v5273_v34 = vadd.f32 %v5269_v42, %v5217_v13  ;;  %v5260_v2 = vpop.f32.mrb[188].mxu1  ;;  %v6452_v61 = vpop.f32.mrb[189].mxu0 }
 0x63d   : > { %v6460_v20 = vpop.f32.mrb[189].mxu1  ;;  %v5220_v15 = vpop.f32.mrb[190].mxu0 }
 0x63e   : > { %v5277_v21 = vadd.f32 %v5273_v34, %v5260_v2  ;;  %v5263_v28 = vpop.f32.mrb[190].mxu1  ;;  %v6453_v29 = vpop.f32.mrb[191].mxu0 }
 0x63f   : > { %v6461_v22 = vpop.f32.mrb[191].mxu1 }
 0x640   : > { %v5288_v35 = vadd.f32 %v7982_v4, %v5277_v21 }
 0x642   : > { %v5292_v56 = vadd.f32 %v6682_v14, %v5288_v35 }
 0x644   : > { %v5302_v8 = vsel %vm520_vm1, %v5292_v56, 0.0 }
 0x645   : > { %5303 = vadd.xlane.f32.xlu1 %v5302_v8 }
 0x650   : > { %v5298_v33 = vpop.xlane.xlu1 %5297 }
 0x651   : > { %v5307_v60 = vmul.f32 0.03125, %v5298_v33 }
 0x653   : > { %v5311_v23 = vsub.f32 %v5290_v1, %v5307_v60 }
 0x655   : > { %v5315_v27 = vmul.f32 %v5311_v23, %v5311_v23 }
 0x657   : > { %v5321_v31 = vsel %vm520_vm1, %v5315_v27, 0.0 }
 0x658   : > { %5322 = vadd.xlane.f32.xlu1 %v5321_v31 }
 0x670   : > { %v5301_v9 = vpop.xlane.xlu0 %5300 }
 0x671   : > { %v5308_v32 = vmul.f32 0.03125, %v5301_v9 }
 0x673   : > { %v5312_v37 = vsub.f32 %v5291_v54, %v5308_v32 }
 0x675   : > { %v5316_v52 = vmul.f32 %v5312_v37, %v5312_v37 }
 0x677   : > { %v5324_v4 = vsel %vm520_vm1, %v5316_v52, 0.0 }
 0x678   : > { %5325 = vadd.xlane.f32.xlu0 %v5324_v4 }
 0x6c5   : > { %v5320_v36 = vpop.xlane.xlu0 %5319 }
 0x6c6   : > { %v5330_v45 = vmul.f32 0.03125, %v5320_v36 }
 0x6c8   : > { %v5334_v62 = vadd.f32 1e-05, %v5330_v45 }
 0x6ca   : > { %6671 = vrsqrt.f32 %v5334_v62 }
 0x6d2   : > { %v5304_v55 = vpop.xlane.xlu1 %5303 }
 0x6d3   : > { %v5309_v57 = vmul.f32 0.03125, %v5304_v55 }
 0x6d4   : > { %v6672_v1 = vpop.eup %6671 }
 0x6d5   : > { %v5342_v43 = vmul.f32 %v6672_v1, %v5310_v50  ;;  %v5313_v63 = vsub.f32 %v5292_v56, %v5309_v57 }
 0x6d7   : > { %v5353_v47 = vmul.f32 %v5638_v38, %v5342_v43  ;;  %v5317_v49 = vmul.f32 %v5313_v63, %v5313_v63 }
 0x6d9   : > { %v5364_v53 = vadd.f32 %v5639_v16, %v5353_v47  ;;  %v5327_v6 = vsel %vm520_vm1, %v5317_v49, 0.0 }
 0x6da   : > { %5328 = vadd.xlane.f32.xlu1 %v5327_v6 }
 0x6db   : > { %5368 = vst.msk [vmem:[%s8009_s17] sm:$0xff] %vm520_vm1, %v5364_v53 }
 0x6e5   : > { %v5323_v30 = vpop.xlane.xlu1 %5322 }
 0x6e6   : > { %v5331_v51 = vmul.f32 0.03125, %v5323_v30 }
 0x6e8   : > { %v5335_v46 = vadd.f32 1e-05, %v5331_v51 }
 0x6ea   : > { %6673 = vrsqrt.f32 %v5335_v46 }
 0x6f4   : > { %v6674_v39 = vpop.eup %6673 }
 0x6f5   : > { %v5343_v58 = vmul.f32 %v6674_v39, %v5311_v23 }
 0x6f7   : > { %v5354_v25 = vmul.f32 %v5638_v38, %v5343_v58 }
 0x6f9   : > { %v5365_v48 = vadd.f32 %v5639_v16, %v5354_v25 }
 0x6fb   : > { %5369 = vst.msk [vmem:[%s8009_s17 + $0x8] sm:$0xff] %vm520_vm1, %v5365_v48 }
 0x705   : > { %v5326_v0 = vpop.xlane.xlu0 %5325 }
 0x706   : > { %v5332_v24 = vmul.f32 0.03125, %v5326_v0 }
 0x708   : > { %v5336_v12 = vadd.f32 1e-05, %v5332_v24 }
 0x70a   : > { %6675 = vrsqrt.f32 %v5336_v12 }
 0x714   : > { %v6676_v54 = vpop.eup %6675 }
 0x715   : > { %v5344_v41 = vmul.f32 %v6676_v54, %v5312_v37 }
 0x717   : > { %v5355_v7 = vmul.f32 %v5638_v38, %v5344_v41 }
 0x719   : > { %v5366_v3 = vadd.f32 %v5639_v16, %v5355_v7 }
 0x71b   : > { %5370 = vst.msk [vmem:[%s8009_s17 + $0x10] sm:$0xff] %vm520_vm1, %v5366_v3 }
 0x767   : > { %v5329_v26 = vpop.xlane.xlu1 %5328 }
 0x768   : > { %v5333_v42 = vmul.f32 0.03125, %v5329_v26 }
 0x76a   : > { %v5337_v10 = vadd.f32 1e-05, %v5333_v42 }
 0x76c   : > { %6677 = vrsqrt.f32 %v5337_v10 }
 0x776   : > { %v6678_v59 = vpop.eup %6677 }
 0x777   : > { %v5345_v11 = vmul.f32 %v6678_v59, %v5313_v63 }
 0x779   : > { %v5356_v5 = vmul.f32 %v5638_v38, %v5345_v11 }
 0x77b   : > { %v5367_v44 = vadd.f32 %v5639_v16, %v5356_v5 }
 0x77d   : > { %5371 = vst.msk [vmem:[%s8009_s17 + $0x18] sm:$0xff] %vm520_vm1, %v5367_v44 }
 0x77e   : > { %6752 = shalt.err (!%p6749_p11)
}
 0x77f   : > { %s6753_s19 = scalar_lea.hbm %s8022_s16, 512  ;;  %s6757_s12 = scalar_lea.hbm %s8083_s11, 1024 }
 0x780   : > { %p6754_p13 = scmp.ne.s32.totalorder %s8022_s16, %s6753_s19  ;;  %p6758_p6 = scmp.lt.u32.totalorder %s8022_s16, %s8083_s11 }
 0x781   : > { %p6759_p9 = scmp.lt.u32.totalorder %s6757_s12, %s6753_s19  ;;  %p6761_p10 = scmp.lt.u32.totalorder %s6753_s19, %s8022_s16 }
 0x782   : > { %p6755_p5 = pnand %p6754_p13, %p8106_p1 }
 0x783   : > { %p6760_p12 = por %p6759_p9, %p6758_p6 }
 0x784   : > { %p6756_p0 = pneg %p6755_p5 }
 0x785   : > { %p6762_p2 = por %p6761_p10, %p6760_p12 }
 0x787   : > { %p6763_p3 = pnand %p6762_p2, %p6756_p0 }
 0x789   : > { %6766 = shalt.err (!%p6763_p3)
}
 0x78a   : > { %s6820_s28 = smov 128  }
 0x78b   : > { %6470 = dma.vmem_to_hbm [thread:$0]  (%p8106_p1), %s8024_s13, 512, %s8022_s16, %s8030_s22, %s6820_s28, %s6820_s28, %s6817_s29  }
 0x78c PF: > { %s8107_s15 = sld [smem:[#allocation11_spill]]  ;;  %s8108_s26 = sld [smem:[#allocation15_spill]] }
 0x78d   : > { %p6487_p4 = scmp.ge.s32.totalorder %s6809_s20, 2 }
 0x792   : > { %s5401_s21 = sand.u32 1, %s8107_s15   ;;  %p8109_p7 = scmp.ne.s32.totalorder %s8108_s26, 0 }
 0x793   : > { %s5402_s24 = scalar_lea.sflag [#allocation4], %s5401_s21 }
 0x794   : > { %p6480_p8 = pnand %p6487_p4, %p8109_p7 }
 0x796   : > { %6792 = dma.done.wait (!%p6480_p8), %s5402_s24, 512  }
 0x797   : > { %6794 = vsyncadd (!%p6480_p8), %s5402_s24, 4294966784  ;;  %s8110_s20 = sld [smem:[#allocation13_spill]]  ;;  %s8111_s25 = sld [smem:[#allocation12_spill]] }
 0x798   : > { %s8112_s19 = sld [smem:[#allocation14_spill]]  ;;  %s8113_s17 = smov %s6801_s18 }
 0x79d   : > { %p23_p11 = scmp.ge.s32.totalorder %s8110_s20, 4   ;;  %s8114_s18 = smov %s8111_s25 }
 0x79f   :  { %25 = sbr.rel (!%p23_p11) target bundleno = 5 (0x5), region = 114 }
 0x7a6   :  { %5407 = vsyncpa [#allocation3], 1 }
 0x7a7   :  { %5409 = vsyncpa [#allocation3 + $0x1], 1 }
 0x7a8   :  { %5410 = vsyncpa [#allocation6], 1 }
 0x7a9   :  { %5411 = vsyncpa [#allocation4], 1 }
 0x7aa   :  { %5413 = vsyncpa [#allocation4 + $0x1], 1 }

</bundles_post_ra>
